<compile_context>
chip_gen: v6e
topology: v6e:2x2x1
jax: 0.10.0
libtpu: 0.0.40
codegen_flags: <defaults>
</compile_context>

<pallas_src>
import jax
import jax.numpy as jnp
from jax.experimental import pallas as pl
from jax.experimental.pallas import tpu as pltpu

EPS = 1e-5
NEG_SLOPE = 0.01

Z_DIM = 100        # original noise dim
Z_PAD = 128        # padded K for the first matmul
OUT_DIM = 2        # original output dim
OUT_PAD = 128      # lane-dense padded output width


def _leaky_relu(x):
    return jnp.where(x >= 0, x, NEG_SLOPE * x)


def _batchnorm_train(x, gamma, beta, inv_b):
    # x: [B, F] (f32); gamma/beta: [1, F].  Single fused stats sweep:
    #   mean = sum(x)/B ; var = sum(x*x)/B - mean^2  (biased, training mode)
    s = jnp.sum(x, axis=0, keepdims=True)
    ss = jnp.sum(x * x, axis=0, keepdims=True)
    mean = s * inv_b
    var = ss * inv_b - mean * mean
    inv = jax.lax.rsqrt(var + EPS)
    return (x - mean) * inv * gamma + beta


def generator_kernel(
    x_ref,
    w1_ref, b1_ref, g1_ref, be1_ref,
    w2_ref, b2_ref, g2_ref, be2_ref,
    w3_ref, b3_ref, g3_ref, be3_ref,
    w4_ref, b4_ref,
    w5_ref, b5_ref,
    o_ref,
):
    x = x_ref[...]                       # [B, 128] bf16 (zero-padded noise)
    inv_b = jnp.float32(1.0 / x.shape[0])

    def linear(h_bf16, w_ref, b_ref):
        # bf16 x bf16 MXU matmul, f32 accumulation; bias add in f32.
        return jnp.dot(h_bf16, w_ref[...],
                       preferred_element_type=jnp.float32) + b_ref[...]

    # Block 1: Linear(100->128) -> LeakyReLU -> BatchNorm1d(128)
    h = linear(x, w1_ref, b1_ref)
    h = _leaky_relu(h)
    h = _batchnorm_train(h, g1_ref[...], be1_ref[...], inv_b)

    # Block 2: Linear(128->256) -> LeakyReLU -> BatchNorm1d(256)
    h = linear(h.astype(jnp.bfloat16), w2_ref, b2_ref)
    h = _leaky_relu(h)
    h = _batchnorm_train(h, g2_ref[...], be2_ref[...], inv_b)

    # Block 3: Linear(256->512) -> LeakyReLU -> BatchNorm1d(512)
    h = linear(h.astype(jnp.bfloat16), w3_ref, b3_ref)
    h = _leaky_relu(h)
    h = _batchnorm_train(h, g3_ref[...], be3_ref[...], inv_b)

    # Block 4: Linear(512->1024) -> LeakyReLU
    h = linear(h.astype(jnp.bfloat16), w4_ref, b4_ref)
    h = _leaky_relu(h)

    # Head: Linear(1024->2, padded to 128 lanes) -> Tanh
    y = linear(h.astype(jnp.bfloat16), w5_ref, b5_ref)
    o_ref[...] = jnp.tanh(y)             # [B, 128]; wrapper slices [:, :2]


def init_params(key):
    """Deterministic f32 params (PyTorch-Linear-style uniform bounds).

    Weights are stored [in_features, out_features] (transposed w.r.t.
    PyTorch's [out, in]) so the kernel computes y = x @ W + b directly.
    """
    dims = [(Z_DIM, 128), (128, 256), (256, 512), (512, 1024), (1024, OUT_DIM)]
    params = {}
    keys = jax.random.split(key, 2 * len(dims))
    for i, (fin, fout) in enumerate(dims):
        bound = 1.0 / (fin ** 0.5)
        params[f"w{i+1}"] = jax.random.uniform(
            keys[2 * i], (fin, fout), jnp.float32, -bound, bound)
        params[f"b{i+1}"] = jax.random.uniform(
            keys[2 * i + 1], (1, fout), jnp.float32, -bound, bound)
    # BatchNorm affine params (PyTorch default: gamma=1, beta=0).
    for i, f in enumerate([128, 256, 512]):
        params[f"g{i+1}"] = jnp.ones((1, f), jnp.float32)
        params[f"be{i+1}"] = jnp.zeros((1, f), jnp.float32)
    return params


def pack_params_for_kernel(params):
    """One-time host-side packing: pad W1 rows (100->128), pad the head to a
    lane-dense 128-wide output, and cast weights to bf16 (biases / BN stay f32).
    """
    kp = {}
    w1 = jnp.pad(params["w1"], ((0, Z_PAD - Z_DIM), (0, 0)))
    kp["w1"] = w1.astype(jnp.bfloat16)
    kp["w2"] = params["w2"].astype(jnp.bfloat16)
    kp["w3"] = params["w3"].astype(jnp.bfloat16)
    kp["w4"] = params["w4"].astype(jnp.bfloat16)
    kp["w5"] = jnp.pad(params["w5"],
                       ((0, 0), (0, OUT_PAD - OUT_DIM))).astype(jnp.bfloat16)
    kp["b1"], kp["b2"], kp["b3"], kp["b4"] = (
        params["b1"], params["b2"], params["b3"], params["b4"])
    kp["b5"] = jnp.pad(params["b5"], ((0, 0), (0, OUT_PAD - OUT_DIM)))
    for name in ("g1", "be1", "g2", "be2", "g3", "be3"):
        kp[name] = params[name]
    return kp


def generator_forward(x, kparams):
    B = x.shape[0]
    # Zero-pad the noise dim to 128 and cast to bf16 (matches padded W1 rows).
    xp = jnp.pad(x, ((0, 0), (0, Z_PAD - Z_DIM))).astype(jnp.bfloat16)

    vmem_spec = pl.BlockSpec(memory_space=pltpu.MemorySpace.VMEM)
    operands = [
        xp,
        kparams["w1"], kparams["b1"], kparams["g1"], kparams["be1"],
        kparams["w2"], kparams["b2"], kparams["g2"], kparams["be2"],
        kparams["w3"], kparams["b3"], kparams["g3"], kparams["be3"],
        kparams["w4"], kparams["b4"],
        kparams["w5"], kparams["b5"],
    ]
    out_padded = pl.pallas_call(
        generator_kernel,
        out_shape=jax.ShapeDtypeStruct((B, OUT_PAD), jnp.float32),
        in_specs=[vmem_spec] * len(operands),
        out_specs=vmem_spec,
    )(*operands)
    return out_padded[:, :OUT_DIM]

# TODO(synk): if batch size grows, add a batch-parallel grid (TILE_B~256) with
# a two-pass / accumulated-stats BatchNorm so v7x's second TensorCore is used
# and per-batch BN semantics are preserved across tiles.


if __name__ == "__main__":
    key = jax.random.PRNGKey(0)
    k_param, k_x = jax.random.split(key)
    params = init_params(k_param)
    kparams = pack_params_for_kernel(params)

    B = 8  # small batch; BatchNorm1d needs B > 1
    x = jax.random.normal(k_x, (B, Z_DIM), dtype=jnp.float32)

    out = generator_forward(x, kparams)
    out = jax.block_until_ready(out)

    assert out.shape == (B, OUT_DIM), out.shape
    assert out.dtype == jnp.float32, out.dtype
    assert bool(jnp.all(jnp.isfinite(out)))
    assert bool(jnp.all(jnp.abs(out) <= 1.0))  # tanh output range

    print("KERNEL_OK")
</pallas_src>

<mosaic_0001>
module attributes {stable_mosaic.version = 11 : i64} {
  func.func @generator_kernel(%arg0: memref<8x128xbf16, #tpu.memory_space<vmem>>, %arg1: memref<128x128xbf16, #tpu.memory_space<vmem>>, %arg2: memref<1x128xf32, #tpu.memory_space<vmem>>, %arg3: memref<1x128xf32, #tpu.memory_space<vmem>>, %arg4: memref<1x128xf32, #tpu.memory_space<vmem>>, %arg5: memref<128x256xbf16, #tpu.memory_space<vmem>>, %arg6: memref<1x256xf32, #tpu.memory_space<vmem>>, %arg7: memref<1x256xf32, #tpu.memory_space<vmem>>, %arg8: memref<1x256xf32, #tpu.memory_space<vmem>>, %arg9: memref<256x512xbf16, #tpu.memory_space<vmem>>, %arg10: memref<1x512xf32, #tpu.memory_space<vmem>>, %arg11: memref<1x512xf32, #tpu.memory_space<vmem>>, %arg12: memref<1x512xf32, #tpu.memory_space<vmem>>, %arg13: memref<512x1024xbf16, #tpu.memory_space<vmem>>, %arg14: memref<1x1024xf32, #tpu.memory_space<vmem>>, %arg15: memref<1024x128xbf16, #tpu.memory_space<vmem>>, %arg16: memref<1x128xf32, #tpu.memory_space<vmem>>, %arg17: memref<8x128xf32, #tpu.memory_space<vmem>>) attributes {dimension_semantics = [], scalar_prefetch = 0 : i64, scratch_operands = 0 : i64, tpu.core_type = #tpu.core_type<tc>} {
    %c0 = arith.constant 0 : index
    %c0_0 = arith.constant 0 : index
    %0 = vector.load %arg0[%c0, %c0_0] : memref<8x128xbf16, #tpu.memory_space<vmem>>, vector<8x128xbf16>
    %c0_1 = arith.constant 0 : index
    %c0_2 = arith.constant 0 : index
    %1 = vector.load %arg1[%c0_1, %c0_2] : memref<128x128xbf16, #tpu.memory_space<vmem>>, vector<128x128xbf16>
    %cst = arith.constant dense<0.000000e+00> : vector<8x128xf32>
    %2 = tpu.matmul %0, %1, %cst {dimension_numbers = #tpu.dot_dimension_numbers<[1], [0], [0], [1], [0, 0, 1, 1], [], []>} : vector<8x128xbf16>, vector<128x128xbf16>, vector<8x128xf32> -> vector<8x128xf32>
    %c0_3 = arith.constant 0 : index
    %c0_4 = arith.constant 0 : index
    %3 = vector.load %arg2[%c0_3, %c0_4] : memref<1x128xf32, #tpu.memory_space<vmem>>, vector<1x128xf32>
    %4 = vector.broadcast %3 : vector<1x128xf32> to vector<8x128xf32>
    %5 = arith.addf %2, %4 : vector<8x128xf32>
    %cst_5 = arith.constant 0.000000e+00 : f32
    %6 = vector.broadcast %cst_5 : f32 to vector<8x128xf32>
    %7 = arith.cmpf oge, %5, %6 : vector<8x128xf32>
    %cst_6 = arith.constant 0.00999999977 : f32
    %8 = vector.broadcast %cst_6 : f32 to vector<8x128xf32>
    %9 = arith.mulf %8, %5 : vector<8x128xf32>
    %10 = arith.select %7, %5, %9 : vector<8x128xi1>, vector<8x128xf32>
    %c0_7 = arith.constant 0 : index
    %c0_8 = arith.constant 0 : index
    %11 = vector.load %arg3[%c0_7, %c0_8] : memref<1x128xf32, #tpu.memory_space<vmem>>, vector<1x128xf32>
    %c0_9 = arith.constant 0 : index
    %c0_10 = arith.constant 0 : index
    %12 = vector.load %arg4[%c0_9, %c0_10] : memref<1x128xf32, #tpu.memory_space<vmem>>, vector<1x128xf32>
    %cst_11 = arith.constant dense<0.000000e+00> : vector<128xf32>
    %13 = vector.multi_reduction <add>, %10, %cst_11 [0] : vector<8x128xf32> to vector<128xf32>
    %14 = vector.shape_cast %13 : vector<128xf32> to vector<1x128xf32>
    %15 = arith.mulf %10, %10 : vector<8x128xf32>
    %cst_12 = arith.constant dense<0.000000e+00> : vector<128xf32>
    %16 = vector.multi_reduction <add>, %15, %cst_12 [0] : vector<8x128xf32> to vector<128xf32>
    %17 = vector.shape_cast %16 : vector<128xf32> to vector<1x128xf32>
    %cst_13 = arith.constant 1.250000e-01 : f32
    %18 = vector.broadcast %cst_13 : f32 to vector<1x128xf32>
    %19 = arith.mulf %14, %18 : vector<1x128xf32>
    %cst_14 = arith.constant 1.250000e-01 : f32
    %20 = vector.broadcast %cst_14 : f32 to vector<1x128xf32>
    %21 = arith.mulf %17, %20 : vector<1x128xf32>
    %22 = arith.mulf %19, %19 : vector<1x128xf32>
    %23 = arith.subf %21, %22 : vector<1x128xf32>
    %cst_15 = arith.constant 9.99999974E-6 : f32
    %24 = vector.broadcast %cst_15 : f32 to vector<1x128xf32>
    %25 = arith.addf %23, %24 : vector<1x128xf32>
    %26 = math.rsqrt %25 : vector<1x128xf32>
    %27 = vector.broadcast %19 : vector<1x128xf32> to vector<8x128xf32>
    %28 = arith.subf %10, %27 : vector<8x128xf32>
    %29 = vector.broadcast %26 : vector<1x128xf32> to vector<8x128xf32>
    %30 = arith.mulf %28, %29 : vector<8x128xf32>
    %31 = vector.broadcast %11 : vector<1x128xf32> to vector<8x128xf32>
    %32 = arith.mulf %30, %31 : vector<8x128xf32>
    %33 = vector.broadcast %12 : vector<1x128xf32> to vector<8x128xf32>
    %34 = arith.addf %32, %33 : vector<8x128xf32>
    %35 = arith.truncf %34 : vector<8x128xf32> to vector<8x128xbf16>
    %c0_16 = arith.constant 0 : index
    %c0_17 = arith.constant 0 : index
    %36 = vector.load %arg5[%c0_16, %c0_17] : memref<128x256xbf16, #tpu.memory_space<vmem>>, vector<128x256xbf16>
    %cst_18 = arith.constant dense<0.000000e+00> : vector<8x256xf32>
    %37 = tpu.matmul %35, %36, %cst_18 {dimension_numbers = #tpu.dot_dimension_numbers<[1], [0], [0], [1], [0, 0, 1, 1], [], []>} : vector<8x128xbf16>, vector<128x256xbf16>, vector<8x256xf32> -> vector<8x256xf32>
    %c0_19 = arith.constant 0 : index
    %c0_20 = arith.constant 0 : index
    %38 = vector.load %arg6[%c0_19, %c0_20] : memref<1x256xf32, #tpu.memory_space<vmem>>, vector<1x256xf32>
    %39 = vector.broadcast %38 : vector<1x256xf32> to vector<8x256xf32>
    %40 = arith.addf %37, %39 : vector<8x256xf32>
    %cst_21 = arith.constant 0.000000e+00 : f32
    %41 = vector.broadcast %cst_21 : f32 to vector<8x256xf32>
    %42 = arith.cmpf oge, %40, %41 : vector<8x256xf32>
    %cst_22 = arith.constant 0.00999999977 : f32
    %43 = vector.broadcast %cst_22 : f32 to vector<8x256xf32>
    %44 = arith.mulf %43, %40 : vector<8x256xf32>
    %45 = arith.select %42, %40, %44 : vector<8x256xi1>, vector<8x256xf32>
    %c0_23 = arith.constant 0 : index
    %c0_24 = arith.constant 0 : index
    %46 = vector.load %arg7[%c0_23, %c0_24] : memref<1x256xf32, #tpu.memory_space<vmem>>, vector<1x256xf32>
    %c0_25 = arith.constant 0 : index
    %c0_26 = arith.constant 0 : index
    %47 = vector.load %arg8[%c0_25, %c0_26] : memref<1x256xf32, #tpu.memory_space<vmem>>, vector<1x256xf32>
    %cst_27 = arith.constant dense<0.000000e+00> : vector<256xf32>
    %48 = vector.multi_reduction <add>, %45, %cst_27 [0] : vector<8x256xf32> to vector<256xf32>
    %49 = vector.shape_cast %48 : vector<256xf32> to vector<1x256xf32>
    %50 = arith.mulf %45, %45 : vector<8x256xf32>
    %cst_28 = arith.constant dense<0.000000e+00> : vector<256xf32>
    %51 = vector.multi_reduction <add>, %50, %cst_28 [0] : vector<8x256xf32> to vector<256xf32>
    %52 = vector.shape_cast %51 : vector<256xf32> to vector<1x256xf32>
    %cst_29 = arith.constant 1.250000e-01 : f32
    %53 = vector.broadcast %cst_29 : f32 to vector<1x256xf32>
    %54 = arith.mulf %49, %53 : vector<1x256xf32>
    %cst_30 = arith.constant 1.250000e-01 : f32
    %55 = vector.broadcast %cst_30 : f32 to vector<1x256xf32>
    %56 = arith.mulf %52, %55 : vector<1x256xf32>
    %57 = arith.mulf %54, %54 : vector<1x256xf32>
    %58 = arith.subf %56, %57 : vector<1x256xf32>
    %cst_31 = arith.constant 9.99999974E-6 : f32
    %59 = vector.broadcast %cst_31 : f32 to vector<1x256xf32>
    %60 = arith.addf %58, %59 : vector<1x256xf32>
    %61 = math.rsqrt %60 : vector<1x256xf32>
    %62 = vector.broadcast %54 : vector<1x256xf32> to vector<8x256xf32>
    %63 = arith.subf %45, %62 : vector<8x256xf32>
    %64 = vector.broadcast %61 : vector<1x256xf32> to vector<8x256xf32>
    %65 = arith.mulf %63, %64 : vector<8x256xf32>
    %66 = vector.broadcast %46 : vector<1x256xf32> to vector<8x256xf32>
    %67 = arith.mulf %65, %66 : vector<8x256xf32>
    %68 = vector.broadcast %47 : vector<1x256xf32> to vector<8x256xf32>
    %69 = arith.addf %67, %68 : vector<8x256xf32>
    %70 = arith.truncf %69 : vector<8x256xf32> to vector<8x256xbf16>
    %c0_32 = arith.constant 0 : index
    %c0_33 = arith.constant 0 : index
    %71 = vector.load %arg9[%c0_32, %c0_33] : memref<256x512xbf16, #tpu.memory_space<vmem>>, vector<256x512xbf16>
    %cst_34 = arith.constant dense<0.000000e+00> : vector<8x512xf32>
    %72 = tpu.matmul %70, %71, %cst_34 {dimension_numbers = #tpu.dot_dimension_numbers<[1], [0], [0], [1], [0, 0, 1, 1], [], []>} : vector<8x256xbf16>, vector<256x512xbf16>, vector<8x512xf32> -> vector<8x512xf32>
    %c0_35 = arith.constant 0 : index
    %c0_36 = arith.constant 0 : index
    %73 = vector.load %arg10[%c0_35, %c0_36] : memref<1x512xf32, #tpu.memory_space<vmem>>, vector<1x512xf32>
    %74 = vector.broadcast %73 : vector<1x512xf32> to vector<8x512xf32>
    %75 = arith.addf %72, %74 : vector<8x512xf32>
    %cst_37 = arith.constant 0.000000e+00 : f32
    %76 = vector.broadcast %cst_37 : f32 to vector<8x512xf32>
    %77 = arith.cmpf oge, %75, %76 : vector<8x512xf32>
    %cst_38 = arith.constant 0.00999999977 : f32
    %78 = vector.broadcast %cst_38 : f32 to vector<8x512xf32>
    %79 = arith.mulf %78, %75 : vector<8x512xf32>
    %80 = arith.select %77, %75, %79 : vector<8x512xi1>, vector<8x512xf32>
    %c0_39 = arith.constant 0 : index
    %c0_40 = arith.constant 0 : index
    %81 = vector.load %arg11[%c0_39, %c0_40] : memref<1x512xf32, #tpu.memory_space<vmem>>, vector<1x512xf32>
    %c0_41 = arith.constant 0 : index
    %c0_42 = arith.constant 0 : index
    %82 = vector.load %arg12[%c0_41, %c0_42] : memref<1x512xf32, #tpu.memory_space<vmem>>, vector<1x512xf32>
    %cst_43 = arith.constant dense<0.000000e+00> : vector<512xf32>
    %83 = vector.multi_reduction <add>, %80, %cst_43 [0] : vector<8x512xf32> to vector<512xf32>
    %84 = vector.shape_cast %83 : vector<512xf32> to vector<1x512xf32>
    %85 = arith.mulf %80, %80 : vector<8x512xf32>
    %cst_44 = arith.constant dense<0.000000e+00> : vector<512xf32>
    %86 = vector.multi_reduction <add>, %85, %cst_44 [0] : vector<8x512xf32> to vector<512xf32>
    %87 = vector.shape_cast %86 : vector<512xf32> to vector<1x512xf32>
    %cst_45 = arith.constant 1.250000e-01 : f32
    %88 = vector.broadcast %cst_45 : f32 to vector<1x512xf32>
    %89 = arith.mulf %84, %88 : vector<1x512xf32>
    %cst_46 = arith.constant 1.250000e-01 : f32
    %90 = vector.broadcast %cst_46 : f32 to vector<1x512xf32>
    %91 = arith.mulf %87, %90 : vector<1x512xf32>
    %92 = arith.mulf %89, %89 : vector<1x512xf32>
    %93 = arith.subf %91, %92 : vector<1x512xf32>
    %cst_47 = arith.constant 9.99999974E-6 : f32
    %94 = vector.broadcast %cst_47 : f32 to vector<1x512xf32>
    %95 = arith.addf %93, %94 : vector<1x512xf32>
    %96 = math.rsqrt %95 : vector<1x512xf32>
    %97 = vector.broadcast %89 : vector<1x512xf32> to vector<8x512xf32>
    %98 = arith.subf %80, %97 : vector<8x512xf32>
    %99 = vector.broadcast %96 : vector<1x512xf32> to vector<8x512xf32>
    %100 = arith.mulf %98, %99 : vector<8x512xf32>
    %101 = vector.broadcast %81 : vector<1x512xf32> to vector<8x512xf32>
    %102 = arith.mulf %100, %101 : vector<8x512xf32>
    %103 = vector.broadcast %82 : vector<1x512xf32> to vector<8x512xf32>
    %104 = arith.addf %102, %103 : vector<8x512xf32>
    %105 = arith.truncf %104 : vector<8x512xf32> to vector<8x512xbf16>
    %c0_48 = arith.constant 0 : index
    %c0_49 = arith.constant 0 : index
    %106 = vector.load %arg13[%c0_48, %c0_49] : memref<512x1024xbf16, #tpu.memory_space<vmem>>, vector<512x1024xbf16>
    %cst_50 = arith.constant dense<0.000000e+00> : vector<8x1024xf32>
    %107 = tpu.matmul %105, %106, %cst_50 {dimension_numbers = #tpu.dot_dimension_numbers<[1], [0], [0], [1], [0, 0, 1, 1], [], []>} : vector<8x512xbf16>, vector<512x1024xbf16>, vector<8x1024xf32> -> vector<8x1024xf32>
    %c0_51 = arith.constant 0 : index
    %c0_52 = arith.constant 0 : index
    %108 = vector.load %arg14[%c0_51, %c0_52] : memref<1x1024xf32, #tpu.memory_space<vmem>>, vector<1x1024xf32>
    %109 = vector.broadcast %108 : vector<1x1024xf32> to vector<8x1024xf32>
    %110 = arith.addf %107, %109 : vector<8x1024xf32>
    %cst_53 = arith.constant 0.000000e+00 : f32
    %111 = vector.broadcast %cst_53 : f32 to vector<8x1024xf32>
    %112 = arith.cmpf oge, %110, %111 : vector<8x1024xf32>
    %cst_54 = arith.constant 0.00999999977 : f32
    %113 = vector.broadcast %cst_54 : f32 to vector<8x1024xf32>
    %114 = arith.mulf %113, %110 : vector<8x1024xf32>
    %115 = arith.select %112, %110, %114 : vector<8x1024xi1>, vector<8x1024xf32>
    %116 = arith.truncf %115 : vector<8x1024xf32> to vector<8x1024xbf16>
    %c0_55 = arith.constant 0 : index
    %c0_56 = arith.constant 0 : index
    %117 = vector.load %arg15[%c0_55, %c0_56] : memref<1024x128xbf16, #tpu.memory_space<vmem>>, vector<1024x128xbf16>
    %cst_57 = arith.constant dense<0.000000e+00> : vector<8x128xf32>
    %118 = tpu.matmul %116, %117, %cst_57 {dimension_numbers = #tpu.dot_dimension_numbers<[1], [0], [0], [1], [0, 0, 1, 1], [], []>} : vector<8x1024xbf16>, vector<1024x128xbf16>, vector<8x128xf32> -> vector<8x128xf32>
    %c0_58 = arith.constant 0 : index
    %c0_59 = arith.constant 0 : index
    %119 = vector.load %arg16[%c0_58, %c0_59] : memref<1x128xf32, #tpu.memory_space<vmem>>, vector<1x128xf32>
    %120 = vector.broadcast %119 : vector<1x128xf32> to vector<8x128xf32>
    %121 = arith.addf %118, %120 : vector<8x128xf32>
    %122 = math.tanh %121 : vector<8x128xf32>
    %c0_60 = arith.constant 0 : index
    %c0_61 = arith.constant 0 : index
    %123 = vector.load %arg17[%c0_60, %c0_61] : memref<8x128xf32, #tpu.memory_space<vmem>>, vector<8x128xf32>
    tpu.vector_store %arg17[%c0_60, %c0_61], %122 {strides = array<i32>} : memref<8x128xf32, #tpu.memory_space<vmem>>, vector<8x128xf32>,
    return
  }
}

</mosaic_0001>

<bundles_post_ra>
// kernel: tpu_custom_call.1
= control target key start
LH: loop header
LB: loop body
LE: loop exit
PB: predicated region body
PF: predicated region fallthrough
CT: control target
= control target key end

     0   :  { %s5224_s0 = inlined_call_operand.hbm [shape: bf16[8,128], index: 0, kind: input, shape index: {}]   ;;  %s5225_s1 = inlined_call_operand.hbm [shape: bf16[128,128], index: 1, kind: input, shape index: {}]   ;;  %s5226_s2 = inlined_call_operand.hbm [shape: f32[1,128], index: 2, kind: input, shape index: {}]   ;;  %s5227_s3 = inlined_call_operand.hbm [shape: f32[1,128], index: 3, kind: input, shape index: {}]   ;;  %s5228_s4 = inlined_call_operand.hbm [shape: f32[1,128], index: 4, kind: input, shape index: {}]   ;;  %s5229_s5 = inlined_call_operand.hbm [shape: bf16[128,256], index: 5, kind: input, shape index: {}]   ;;  %s5230_s6 = inlined_call_operand.hbm [shape: f32[1,256], index: 6, kind: input, shape index: {}]   ;;  %s5231_s7 = inlined_call_operand.hbm [shape: f32[1,256], index: 7, kind: input, shape index: {}]   ;;  %s5232_s8 = inlined_call_operand.hbm [shape: f32[1,256], index: 8, kind: input, shape index: {}]   ;;  %s5233_s9 = inlined_call_operand.hbm [shape: bf16[256,512], index: 9, kind: input, shape index: {}]   ;;  %s5234_s10 = inlined_call_operand.vmem [shape: f32[1,512], index: 10, kind: input, shape index: {}]   ;;  %s5235_s11 = inlined_call_operand.vmem [shape: f32[1,512], index: 11, kind: input, shape index: {}]   ;;  %s5236_s12 = inlined_call_operand.vmem [shape: f32[1,512], index: 12, kind: input, shape index: {}]   ;;  %s5237_s13 = inlined_call_operand.hbm [shape: bf16[512,1024], index: 13, kind: input, shape index: {}]   ;;  %s5238_s14 = inlined_call_operand.vmem [shape: f32[1,1024], index: 14, kind: input, shape index: {}]   ;;  %s5239_s15 = inlined_call_operand.hbm [shape: bf16[1024,128], index: 15, kind: input, shape index: {}]   ;;  %s5240_s16 = inlined_call_operand.vmem [shape: f32[1,128], index: 16, kind: input, shape index: {}]   ;;  %s5241_s17 = inlined_call_operand.hbm [shape: f32[8,128], index: 17, kind: output, shape index: {}]  }
   0x1   :  { %5242 = sst [smem:[#allocation31_spill]] %s5224_s0 }
   0x2   :  { %5243 = sst [smem:[#allocation32_spill]] %s5225_s1 }
   0x3   :  { %22 = vsyncpa [#allocation3], 0 }
   0x4   :  { %23 = vsyncpa [#allocation6], 0 }
   0x5   :  { %24 = vsyncpa [#allocation9], 0 }
   0x6   :  { %25 = vsyncpa [#allocation12], 0 }
   0x7   :  { %26 = vsyncpa [#allocation15], 0 }
   0x8   :  { %27 = vsyncpa [#allocation18], 0 }
   0x9   :  { %28 = vsyncpa [#allocation21], 0 }
   0xa   :  { %29 = vsyncpa [#allocation4], 0  ;;  %s4904_s24 = smov [#allocation5]  }
   0xb   :  { %s45_s25 = sshll.u32 %s4904_s24, 4  ;;  %s46_s25 = int_to_ptr.vmem [resolvable:$true] %s45_s25 }
   0xc   :  { %s4636_s26 = scalar_lea.vmem %s46_s25, 1024  ;;  %p4641_p1 = scmp.lt.s32.totalorder %s46_s25, %s46_s25 }
   0xd   :  { %p4637_p0 = scmp.ne.s32.totalorder %s46_s25, %s4636_s26  ;;  %p4642_p2 = scmp.lt.s32.totalorder %s4636_s26, %s4636_s26 }
   0xf   :  { %p4643_p3 = por %p4642_p2, %p4641_p1 }
  0x11   :  { %p4644_p4 = pnand %p4643_p3, %p4637_p0 }
  0x13   :  { %4647 = shalt.err (!%p4644_p4)
}
  0x14   :  { %s4905_s27 = smov 64   ;;  %s4906_s28 = smov 4  }
  0x15   :  { %s5244_s30 = sld [smem:[#allocation32_spill]]  ;;  %s4907_s18 = smov [#allocation8]  }
  0x16   :  { %s68_s19 = sshll.u32 %s4907_s18, 4  ;;  %s4908_s1 = smov [#allocation11]   ;;  %s69_s19 = int_to_ptr.vmem [resolvable:$true] %s68_s19 }
  0x17   :  { %s87_s20 = sshll.u32 %s4908_s1, 4  ;;  %s4656_s21 = scalar_lea.vmem %s69_s19, 16  ;;  %s88_s20 = int_to_ptr.vmem [resolvable:$true] %s87_s20 }
  0x18   :  { %p4657_p5 = scmp.ne.s32.totalorder %s69_s19, %s4656_s21  ;;  %s4660_s22 = scalar_lea.vmem %s69_s19, 32 }
  0x19   :  { %p4661_p6 = scmp.lt.s32.totalorder %s69_s19, %s69_s19  ;;  %p4662_p7 = scmp.lt.s32.totalorder %s4660_s22, %s4656_s21 }
  0x1b   :  { %51 = dma.hbm_to_vmem [thread:$0]  %s5244_s30, 1024, %s46_s25, [#allocation6], %s4905_s27, %s4905_s27, %s4906_s28  }
  0x1c   :  { %p4663_p8 = por %p4662_p7, %p4661_p6 }
  0x1e   :  { %p4664_p9 = pnand %p4663_p8, %p4657_p5 }
  0x20   :  { %4667 = shalt.err (!%p4664_p9)
}
  0x21   :  { %71 = dma.hbm_to_vmem [thread:$0]  %s5227_s3, 16, %s69_s19, [#allocation9]  }
  0x22   :  { %s4676_s26 = scalar_lea.vmem %s88_s20, 2048  ;;  %p4681_p11 = scmp.lt.s32.totalorder %s88_s20, %s88_s20 }
  0x23   :  { %p4677_p10 = scmp.ne.s32.totalorder %s88_s20, %s4676_s26  ;;  %p4682_p12 = scmp.lt.s32.totalorder %s4676_s26, %s4676_s26 }
  0x25   :  { %p4683_p13 = por %p4682_p12, %p4681_p11 }
  0x27   :  { %p4684_p0 = pnand %p4683_p13, %p4677_p10 }
  0x29   :  { %4687 = shalt.err (!%p4684_p0)
}
  0x2a   :  { %s4909_s25 = smov 128   ;;  %s4910_s29 = smov 8  }
  0x2b   :  { %93 = dma.hbm_to_vmem [thread:$0]  %s5229_s5, 2048, %s88_s20, [#allocation12], %s4909_s25, %s4909_s25, %s4910_s29  }
  0x2c   :  { %s4911_s18 = smov [#allocation14]   ;;  %s4912_s21 = smov [#allocation17]  }
  0x2d   :  { %s110_s1 = sshll.u32 %s4911_s18, 4  ;;  %s129_s22 = sshll.u32 %s4912_s21, 4  ;;  %s111_s1 = int_to_ptr.vmem [resolvable:$true] %s110_s1  ;;  %s130_s22 = int_to_ptr.vmem [resolvable:$true] %s129_s22 }
  0x2e   :  { %s4696_s3 = scalar_lea.vmem %s111_s1, 32  ;;  %p4701_p2 = scmp.lt.s32.totalorder %s111_s1, %s111_s1 }
  0x2f   :  { %p4697_p1 = scmp.ne.s32.totalorder %s111_s1, %s4696_s3  ;;  %p4702_p3 = scmp.lt.s32.totalorder %s4696_s3, %s4696_s3 }
  0x31   :  { %p4703_p4 = por %p4702_p3, %p4701_p2 }
  0x33   :  { %p4704_p5 = pnand %p4703_p4, %p4697_p1 }
  0x35   :  { %4707 = shalt.err (!%p4704_p5)
}
  0x36   :  { %113 = dma.hbm_to_vmem [thread:$0]  %s5231_s7, 32, %s111_s1, [#allocation15]  }
  0x37   :  { %s4716_s24 = scalar_lea.vmem %s130_s22, 8192  ;;  %p4721_p7 = scmp.lt.s32.totalorder %s130_s22, %s130_s22 }
  0x38   :  { %p4717_p6 = scmp.ne.s32.totalorder %s130_s22, %s4716_s24  ;;  %p4722_p8 = scmp.lt.s32.totalorder %s4716_s24, %s4716_s24 }
  0x3a   :  { %p4723_p9 = por %p4722_p8, %p4721_p7 }
  0x3c   :  { %p4724_p10 = pnand %p4723_p9, %p4717_p6 }
  0x3e   :  { %4727 = shalt.err (!%p4724_p10)
}
  0x3f   :  { %s4913_s5 = smov 256   ;;  %s4914_s20 = smov 16  }
  0x40   :  { %135 = dma.hbm_to_vmem [thread:$0]  %s5233_s9, 8192, %s130_s22, [#allocation18], %s4913_s5, %s4913_s5, %s4914_s20  }
  0x41   :  { %s4915_s29 = smov [#allocation2]   ;;  %s4916_s30 = smov [#allocation7]  }
  0x42   :  { %s36_s0 = sshll.u32 %s4915_s29, 4  ;;  %s58_s18 = sshll.u32 %s4916_s30, 4  ;;  %s37_s0 = int_to_ptr.vmem [resolvable:$true] %s36_s0  ;;  %s59_s18 = int_to_ptr.vmem [resolvable:$true] %s58_s18 }
  0x43   :  { %s4736_s7 = scalar_lea.vmem %s37_s0, 64  ;;  %p4741_p12 = scmp.lt.s32.totalorder %s37_s0, %s37_s0 }
  0x44   :  { %p4737_p11 = scmp.ne.s32.totalorder %s37_s0, %s4736_s7  ;;  %p4742_p13 = scmp.lt.s32.totalorder %s4736_s7, %s4736_s7 }
  0x46   :  { %p4743_p0 = por %p4742_p13, %p4741_p12 }
  0x48   :  { %p4744_p1 = pnand %p4743_p0, %p4737_p11 }
  0x4a   :  { %4747 = shalt.err (!%p4744_p1)
}
  0x4b   :  { %s5245_s3 = sld [smem:[#allocation31_spill]]  ;;  %s4756_s19 = scalar_lea.vmem %s59_s18, 16 }
  0x4c   :  { %p4757_p2 = scmp.ne.s32.totalorder %s59_s18, %s4756_s19  ;;  %s4760_s9 = scalar_lea.vmem %s59_s18, 32 }
  0x4d   :  { %p4761_p3 = scmp.lt.s32.totalorder %s59_s18, %s59_s18  ;;  %p4762_p4 = scmp.lt.s32.totalorder %s4760_s9, %s4756_s19 }
  0x4f   :  { %p4763_p5 = por %p4762_p4, %p4761_p3 }
  0x51   :  { %39 = dma.hbm_to_vmem [thread:$0]  %s5245_s3, 64, %s37_s0, [#allocation3]  }
  0x52   :  { %p4764_p6 = pnand %p4763_p5, %p4757_p2 }
  0x54   :  { %4767 = shalt.err (!%p4764_p6)
}
  0x55   :  { %61 = dma.hbm_to_vmem [thread:$0]  %s5226_s2, 16, %s59_s18, [#allocation6]  }
  0x56   :  { %s4917_s24 = smov [#allocation10]   ;;  %s4918_s20 = smov [#allocation13]  }
  0x57   :  { %s78_s5 = sshll.u32 %s4917_s24, 4  ;;  %s100_s26 = sshll.u32 %s4918_s20, 4  ;;  %s79_s5 = int_to_ptr.vmem [resolvable:$true] %s78_s5  ;;  %s101_s26 = int_to_ptr.vmem [resolvable:$true] %s100_s26 }
  0x58   :  { %s4776_s25 = scalar_lea.vmem %s79_s5, 16  ;;  %s4780_s29 = scalar_lea.vmem %s79_s5, 32 }
  0x59   :  { %p4777_p7 = scmp.ne.s32.totalorder %s79_s5, %s4776_s25  ;;  %p4781_p8 = scmp.lt.s32.totalorder %s79_s5, %s79_s5 }
  0x5a   :  { %p4782_p9 = scmp.lt.s32.totalorder %s4780_s29, %s4776_s25 }
  0x5c   :  { %p4783_p10 = por %p4782_p9, %p4781_p8 }
  0x5e   :  { %p4784_p11 = pnand %p4783_p10, %p4777_p7 }
  0x60   :  { %4787 = shalt.err (!%p4784_p11)
}
  0x61   :  { %81 = dma.hbm_to_vmem [thread:$0]  %s5228_s4, 16, %s79_s5, [#allocation9]  }
  0x62   :  { %s4796_s7 = scalar_lea.vmem %s101_s26, 32  ;;  %p4801_p13 = scmp.lt.s32.totalorder %s101_s26, %s101_s26 }
  0x63   :  { %p4797_p12 = scmp.ne.s32.totalorder %s101_s26, %s4796_s7  ;;  %p4802_p0 = scmp.lt.s32.totalorder %s4796_s7, %s4796_s7 }
  0x65   :  { %p4803_p1 = por %p4802_p0, %p4801_p13 }
  0x67   :  { %p4804_p2 = pnand %p4803_p1, %p4797_p12 }
  0x69   :  { %4807 = shalt.err (!%p4804_p2)
}
  0x6a   :  { %103 = dma.hbm_to_vmem [thread:$0]  %s5230_s6, 32, %s101_s26, [#allocation12]  }
  0x6b   :  { %s4919_s1 = smov [#allocation16]   ;;  %s4920_s3 = smov [#allocation19]  }
  0x6c   :  { %s120_s21 = sshll.u32 %s4919_s1, 4  ;;  %s147_s19 = sshll.u32 %s4920_s3, 4  ;;  %s121_s21 = int_to_ptr.vmem [resolvable:$true] %s120_s21  ;;  %s148_s19 = int_to_ptr.vmem [resolvable:$true] %s147_s19 }
  0x6d   :  { %s4816_s9 = scalar_lea.vmem %s121_s21, 32  ;;  %p4821_p4 = scmp.lt.s32.totalorder %s121_s21, %s121_s21 }
  0x6e   :  { %p4817_p3 = scmp.ne.s32.totalorder %s121_s21, %s4816_s9  ;;  %p4822_p5 = scmp.lt.s32.totalorder %s4816_s9, %s4816_s9 }
  0x70   :  { %p4823_p6 = por %p4822_p5, %p4821_p4 }
  0x72   :  { %p4824_p7 = pnand %p4823_p6, %p4817_p3 }
  0x74   :  { %4827 = shalt.err (!%p4824_p7)
}
  0x75   :  { %123 = dma.hbm_to_vmem [thread:$0]  %s5232_s8, 32, %s121_s21, [#allocation15]  }
  0x76   :  { %s4836_s23 = scalar_lea.vmem %s148_s19, 32768  ;;  %p4841_p9 = scmp.lt.s32.totalorder %s148_s19, %s148_s19 }
  0x77   :  { %p4837_p8 = scmp.ne.s32.totalorder %s148_s19, %s4836_s23  ;;  %p4842_p10 = scmp.lt.s32.totalorder %s4836_s23, %s4836_s23 }
  0x79   :  { %p4843_p11 = por %p4842_p10, %p4841_p9 }
  0x7b   :  { %p4844_p12 = pnand %p4843_p11, %p4837_p8 }
  0x7d   :  { %4847 = shalt.err (!%p4844_p12)
}
  0x7e   :  { %s4921_s6 = smov 512   ;;  %s4922_s24 = smov 32  }
  0x7f   :  { %153 = dma.hbm_to_vmem [thread:$0]  %s5237_s13, 32768, %s148_s19, [#allocation18], %s4921_s6, %s4921_s6, %s4922_s24  }
  0x80   :  { %s4923_s26 = smov [#allocation20]  }
  0x81   :  { %s161_s25 = sshll.u32 %s4923_s26, 4  ;;  %s162_s25 = int_to_ptr.vmem [resolvable:$true] %s161_s25 }
  0x82   :  { %s4856_s29 = scalar_lea.vmem %s162_s25, 8192  ;;  %p4861_p0 = scmp.lt.s32.totalorder %s162_s25, %s162_s25 }
  0x83   :  { %p4857_p13 = scmp.ne.s32.totalorder %s162_s25, %s4856_s29  ;;  %p4862_p1 = scmp.lt.s32.totalorder %s4856_s29, %s4856_s29 }
  0x85   :  { %p4863_p2 = por %p4862_p1, %p4861_p0 }
  0x87   :  { %p4864_p3 = pnand %p4863_p2, %p4857_p13 }
  0x89   :  { %4867 = shalt.err (!%p4864_p3)
}
  0x8a   :  { %167 = dma.hbm_to_vmem [thread:$0]  %s5239_s15, 8192, %s162_s25, [#allocation21], %s4905_s27, %s4905_s27, %s4906_s28  }
  0x8b   :  { %4888 = dma.done.wait [#allocation3], 64  }
  0x8c   :  { %4889 = vsyncadd [#allocation3], 4294967232 }
  0x8d   :  { %4890 = dma.done.wait [#allocation6], 1040  }
  0x8e   :  { %4891 = vsyncadd [#allocation6], 4294966256 }
  0x8f   :  { %4892 = dma.done.wait [#allocation9], 32  }
  0x90   :  { %4893 = vsyncadd [#allocation9], 4294967264 }
  0x91   :  { %4894 = dma.done.wait [#allocation12], 2080  }
  0x92   :  { %4895 = vsyncadd [#allocation12], 4294965216 }
  0x93   :  { %4896 = dma.done.wait [#allocation15], 64  }
  0x94   :  { %4897 = vsyncadd [#allocation15], 4294967232 }
  0x95   :  { %4898 = dma.done.wait [#allocation18], 40960  }
  0x96   :  { %4899 = vsyncadd [#allocation18], 4294926336 }
  0x97   :  { %4900 = dma.done.wait [#allocation21], 8192  }
  0x98   :  { %4901 = vsyncadd [#allocation21], 4294959104  ;;  %v4924_v0 = vmov 0.0   ;;  %vm4925_vm0 = vmmov 0   ;;  %v4420_v1 = vld [vmem:[#allocation5 + $0x38] sm:$0xff]   ;;  %v4421_v2 = vld [vmem:[#allocation5 + $0x30] sm:$0xff]  }
  0x99   :  { %4376 = vmatprep.subr.bf16.mxu0 %v4924_v0  ;;  %4392 = vmatprep.mubr.msk.bf16.mxu0 %vm4925_vm0, %v4924_v0  ;;  %v4422_v3 = vld [vmem:[#allocation5 + $0x28] sm:$0xff]   ;;  %v4423_v4 = vld [vmem:[#allocation5 + $0x20] sm:$0xff]   ;;  %v4424_v5 = vld [vmem:[#allocation5 + $0x18] sm:$0xff]   ;;  %v4926_v21 = vmov 0  }
  0x9a   :  { %4377 = vmatpush3.bf16.msra.mxu0 %v4420_v1  ;;  %v4425_v6 = vld [vmem:[#allocation5 + $0x10] sm:$0xff]   ;;  %v4426_v7 = vld [vmem:[#allocation5 + $0x8] sm:$0xff]   ;;  %v4427_v8 = vld [vmem:[#allocation5] sm:$0xff]   ;;  %500 = vmatprep.mubr.bf16.mxu1 %v4926_v21 }
  0x9b   :  { %4378 = vmatprep.subr.bf16.mxu0 %v4924_v0  ;;  %v207_v9 = vld [vmem:[#allocation2] sm:$0xf]  ;;  %v4431_v12 = vld [vmem:[#allocation11 + $0x64] ss:$8 sps:$4 sm:$0xff]   ;;  %v4433_v13 = vld [vmem:[#allocation11 + $0x60] ss:$8 sps:$4 sm:$0xff]  }
  0x9c   :  { %v4428_v10 = vld [vmem:[#allocation11 + $0x74] ss:$8 sps:$4 sm:$0xff]   ;;  %v4430_v11 = vld [vmem:[#allocation11 + $0x70] ss:$8 sps:$4 sm:$0xff]   ;;  %v4437_v16 = vld [vmem:[#allocation11 + $0x44] ss:$8 sps:$4 sm:$0xff]  }
  0x9d   :  { %468 = vmatprep.subr.bf16.mxu1 %v4428_v10  ;;  %v4434_v14 = vld [vmem:[#allocation11 + $0x54] ss:$8 sps:$4 sm:$0xff]   ;;  %v4436_v15 = vld [vmem:[#allocation11 + $0x50] ss:$8 sps:$4 sm:$0xff]   ;;  %v4439_v17 = vld [vmem:[#allocation11 + $0x40] ss:$8 sps:$4 sm:$0xff]  }
  0x9e   :  { %4379 = vmatpush3.bf16.msra.mxu0 %v4421_v2  ;;  %469 = vmatpush1.bf16.msra.mxu1 %v4430_v11  ;;  %v4440_v18 = vld [vmem:[#allocation11 + $0x34] ss:$8 sps:$4 sm:$0xff]   ;;  %v4442_v19 = vld [vmem:[#allocation11 + $0x30] ss:$8 sps:$4 sm:$0xff]   ;;  %v4443_v20 = vld [vmem:[#allocation11 + $0x24] ss:$8 sps:$4 sm:$0xff]  }
  0x9f   :  { %4380 = vmatprep.subr.bf16.mxu0 %v4924_v0  ;;  %470 = vmatprep.subr.bf16.mxu1 %v4431_v12  ;;  %v4445_v22 = vld [vmem:[#allocation11 + $0x20] ss:$8 sps:$4 sm:$0xff]   ;;  %v4446_v23 = vld [vmem:[#allocation11 + $0x14] ss:$8 sps:$4 sm:$0xff]   ;;  %v4448_v24 = vld [vmem:[#allocation11 + $0x10] ss:$8 sps:$4 sm:$0xff]  }
  0xa0   :  { %v4449_v25 = vld [vmem:[#allocation11 + $0x4] ss:$8 sps:$4 sm:$0xff]   ;;  %v4451_v26 = vld [vmem:[#allocation11] ss:$8 sps:$4 sm:$0xff]   ;;  %v3867_v36 = vld [vmem:[#allocation7] ss:$0 sm:$0xff] }
  0xa1   :  { %v4452_v27 = vld [vmem:[#allocation17 + $0xe0] ss:$16 sps:$4 sm:$0xff]   ;;  %v4454_v28 = vld [vmem:[#allocation17 + $0xe4] ss:$16 sps:$4 sm:$0xff]   ;;  %v4457_v29 = vld [vmem:[#allocation17 + $0xec] ss:$16 sps:$4 sm:$0xff]  }
  0xa2   :  { %4381 = vmatpush3.bf16.msra.mxu0 %v4422_v3  ;;  %471 = vmatpush1.bf16.msra.mxu1 %v4433_v13  ;;  %v4460_v30 = vld [vmem:[#allocation17 + $0xc4] ss:$16 sps:$4 sm:$0xff]   ;;  %v4458_v31 = vld [vmem:[#allocation17 + $0xc0] ss:$16 sps:$4 sm:$0xff]   ;;  %v3877_v2 = vld [vmem:[#allocation10] ss:$0 sm:$0xff] }
  0xa3   :  { %4382 = vmatprep.subr.bf16.mxu0 %v4924_v0  ;;  %472 = vmatprep.subr.bf16.mxu1 %v4434_v14  ;;  %v4466_v32 = vld [vmem:[#allocation17 + $0xa4] ss:$16 sps:$4 sm:$0xff]   ;;  %v4464_v33 = vld [vmem:[#allocation17 + $0xa0] ss:$16 sps:$4 sm:$0xff]   ;;  %v4467_v10 = vld [vmem:[#allocation17 + $0xa8] ss:$16 sps:$4 sm:$0xff]  }
  0xa4   :  { %v4472_v34 = vld [vmem:[#allocation17 + $0x84] ss:$16 sps:$4 sm:$0xff]   ;;  %v4470_v35 = vld [vmem:[#allocation17 + $0x80] ss:$16 sps:$4 sm:$0xff]   ;;  %v4475_v11 = vld [vmem:[#allocation17 + $0x8c] ss:$16 sps:$4 sm:$0xff]  }
  0xa5   :  { %v4473_v12 = vld [vmem:[#allocation17 + $0x88] ss:$16 sps:$4 sm:$0xff]   ;;  %v4478_v13 = vld [vmem:[#allocation17 + $0x64] ss:$16 sps:$4 sm:$0xff]   ;;  %v4481_v14 = vld [vmem:[#allocation17 + $0x6c] ss:$16 sps:$4 sm:$0xff]  }
  0xa6   :  { %4383 = vmatpush3.bf16.msra.mxu0 %v4423_v4  ;;  %473 = vmatpush1.bf16.msra.mxu1 %v4436_v15  ;;  %v4476_v15 = vld [vmem:[#allocation17 + $0x60] ss:$16 sps:$4 sm:$0xff]   ;;  %v4490_v21 = vld [vmem:[#allocation17 + $0x24] ss:$16 sps:$4 sm:$0xff]  }
  0xa7   :  { %4384 = vmatprep.subr.bf16.mxu0 %v4924_v0  ;;  %474 = vmatprep.subr.bf16.mxu1 %v4437_v16  ;;  %v4479_v16 = vld [vmem:[#allocation17 + $0x68] ss:$16 sps:$4 sm:$0xff]  }
  0xaa   :  { %4385 = vmatpush3.bf16.msra.mxu0 %v4424_v5  ;;  %475 = vmatpush1.bf16.msra.mxu1 %v4439_v17  ;;  %v4455_v5 = vld [vmem:[#allocation17 + $0xe8] ss:$16 sps:$4 sm:$0xff]   ;;  %v4484_v17 = vld [vmem:[#allocation17 + $0x44] ss:$16 sps:$4 sm:$0xff]  }
  0xab   :  { %4386 = vmatprep.subr.bf16.mxu0 %v4924_v0  ;;  %476 = vmatprep.subr.bf16.mxu1 %v4440_v18  ;;  %v4487_v18 = vld [vmem:[#allocation17 + $0x4c] ss:$16 sps:$4 sm:$0xff]  }
  0xae   :  { %4387 = vmatpush3.bf16.msra.mxu0 %v4425_v6  ;;  %477 = vmatpush1.bf16.msra.mxu1 %v4442_v19  ;;  %v4482_v19 = vld [vmem:[#allocation17 + $0x40] ss:$16 sps:$4 sm:$0xff]  }
  0xaf   :  { %4388 = vmatprep.subr.bf16.mxu0 %v4924_v0  ;;  %478 = vmatprep.subr.bf16.mxu1 %v4443_v20  ;;  %v4485_v20 = vld [vmem:[#allocation17 + $0x48] ss:$16 sps:$4 sm:$0xff]  }
  0xb2   :  { %4389 = vmatpush3.bf16.msra.mxu0 %v4426_v7  ;;  %479 = vmatpush1.bf16.msra.mxu1 %v4445_v22  ;;  %v4463_v7 = vld [vmem:[#allocation17 + $0xcc] ss:$16 sps:$4 sm:$0xff]  }
  0xb3   :  { %4390 = vmatprep.subr.bf16.mxu0 %v4924_v0  ;;  %480 = vmatprep.subr.bf16.mxu1 %v4446_v23  ;;  %v3876_v0 = vld [vmem:[#allocation8] ss:$0 sm:$0xff]  ;;  %v4493_v22 = vld [vmem:[#allocation17 + $0x2c] ss:$16 sps:$4 sm:$0xff]   ;;  %v4488_v23 = vld [vmem:[#allocation17 + $0x20] ss:$16 sps:$4 sm:$0xff]  }
  0xb6   :  { %4391 = vmatpush3.bf16.msra.mxu0 %v4427_v8  ;;  %481 = vmatpush1.bf16.msra.mxu1 %v4448_v24  ;;  %v4461_v8 = vld [vmem:[#allocation17 + $0xc8] ss:$16 sps:$4 sm:$0xff]  }
  0xb7   :  { %482 = vmatprep.subr.bf16.mxu1 %v4449_v25  ;;  %993 = vmatprep.subr.bf16.mxu0 %v4454_v28  ;;  %v4491_v24 = vld [vmem:[#allocation17 + $0x28] ss:$16 sps:$4 sm:$0xff]   ;;  %v4496_v25 = vld [vmem:[#allocation17 + $0x4] ss:$16 sps:$4 sm:$0xff]  }
  0xb8   :  { %v4497_v28 = vld [vmem:[#allocation17 + $0x8] ss:$16 sps:$4 sm:$0xff]  }
  0xb9   :  { %4393 = vmatmul.mubr.bf16.vlgmr.msra.gmra.mxu0 %v207_v9  ;;  %v4469_v9 = vld [vmem:[#allocation17 + $0xac] ss:$16 sps:$4 sm:$0xff]  }
  0xba   :  { %483 = vmatpush1.bf16.msra.mxu1 %v4451_v26  ;;  %994 = vmatpush1.bf16.msra.mxu0 %v4452_v27  ;;  %v4499_v26 = vld [vmem:[#allocation17 + $0xc] ss:$16 sps:$4 sm:$0xff]   ;;  %v4494_v27 = vld [vmem:[#allocation17] ss:$16 sps:$4 sm:$0xff]  }
  0xbb   :  { %1034 = vmatprep.subr.bf16.mxu1 %v4457_v29  ;;  %995 = vmatprep.subr.bf16.mxu0 %v4460_v30  ;;  %v4502_v29 = vld [vmem:[#allocation17 + $0x1e4] ss:$16 sps:$4 sm:$0xff]   ;;  %v4505_v30 = vld [vmem:[#allocation17 + $0x1ec] ss:$16 sps:$4 sm:$0xff]  }
  0xbe   :  { %996 = vmatpush1.bf16.msra.mxu0 %v4458_v31  ;;  %v4500_v31 = vld [vmem:[#allocation17 + $0x1e0] ss:$16 sps:$4 sm:$0xff]  }
  0xbf   :  { %997 = vmatprep.subr.bf16.mxu0 %v4466_v32  ;;  %v4503_v32 = vld [vmem:[#allocation17 + $0x1e8] ss:$16 sps:$4 sm:$0xff]  }
  0xc2   :  { %998 = vmatpush1.bf16.msra.mxu0 %v4464_v33  ;;  %v4508_v33 = vld [vmem:[#allocation17 + $0x1c4] ss:$16 sps:$4 sm:$0xff]  }
  0xc3   :  { %999 = vmatprep.subr.bf16.mxu0 %v4472_v34  ;;  %v4511_v34 = vld [vmem:[#allocation17 + $0x1cc] ss:$16 sps:$4 sm:$0xff]  }
  0xc6   :  { %1000 = vmatpush1.bf16.msra.mxu0 %v4470_v35  ;;  %v4506_v35 = vld [vmem:[#allocation17 + $0x1c0] ss:$16 sps:$4 sm:$0xff]  }
  0xc7   :  { %1001 = vmatprep.subr.bf16.mxu0 %v4478_v13 }
  0xca   :  { %1002 = vmatpush1.bf16.msra.mxu0 %v4476_v15 }
  0xcb   :  { %1003 = vmatprep.subr.bf16.mxu0 %v4484_v17 }
  0xce   :  { %1004 = vmatpush1.bf16.msra.mxu0 %v4482_v19 }
  0xcf   :  { %1005 = vmatprep.subr.bf16.mxu0 %v4490_v21 }
  0xd2   :  { %1006 = vmatpush1.bf16.msra.mxu0 %v4488_v23 }
  0xd3   :  { %1007 = vmatprep.subr.bf16.mxu0 %v4496_v25 }
  0xd6   :  { %1008 = vmatpush1.bf16.msra.mxu0 %v4494_v27 }
  0xd7   :  { %1009 = vmatprep.subr.bf16.mxu0 %v4502_v29 }
  0xda   :  { %1010 = vmatpush2.bf16.msra.mxu0 %v4500_v31 }
  0xdb   :  { %1011 = vmatprep.subr.bf16.mxu0 %v4508_v33 }
  0xde   :  { %1012 = vmatpush2.bf16.msra.mxu0 %v4506_v35 }
 0x179   :  { %v313_v37 = vpop.f32.mrf.mxu0 }
 0x17a   :  { %v314_v38 = vadd.f32 %v3867_v36, %v313_v37  ;;  %v4509_v36 = vld [vmem:[#allocation17 + $0x1c8] ss:$16 sps:$4 sm:$0xff]   ;;  %v4514_v37 = vld [vmem:[#allocation17 + $0x1a4] ss:$16 sps:$4 sm:$0xff]  }
 0x17b   :  { %v4394_v39 = vpop.f32.mrf.mxu0  ;;  %1013 = vmatprep.subr.bf16.mxu0 %v4514_v37 }
 0x17c   :  { %vm319_vm1 = vcmp.ge.f32.partialorder %v314_v38, 0.0  ;;  %v320_v40 = vmul.f32 0.01, %v314_v38  ;;  %v4512_v39 = vld [vmem:[#allocation17 + $0x1a0] ss:$16 sps:$4 sm:$0xff]  }
 0x17d   :  { %v316_v41 = vpop.f32.mrf.mxu0  ;;  %1014 = vmatpush2.bf16.msra.mxu0 %v4512_v39 }
 0x17e   :  { %v321_v42 = vsel %vm319_vm1, %v314_v38, %v320_v40  ;;  %v4517_v38 = vld [vmem:[#allocation17 + $0x1ac] ss:$16 sps:$4 sm:$0xff]   ;;  %v4515_v40 = vld [vmem:[#allocation17 + $0x1a8] ss:$16 sps:$4 sm:$0xff]   ;;  %v4520_v41 = vld [vmem:[#allocation17 + $0x184] ss:$16 sps:$4 sm:$0xff]  }
 0x17f   :  { %v324_v43 = vrot.slane %v321_v42, 4  ;;  %v330_v44 = vmul.f32 %v321_v42, %v321_v42  ;;  %v4395_v45 = vpop.f32.mrf.mxu0  ;;  %1015 = vmatprep.subr.bf16.mxu0 %v4520_v41 }
 0x180   :  { %v4526_v45 = vld [vmem:[#allocation17 + $0x164] ss:$16 sps:$4 sm:$0xff]  }
 0x181   :  { %v325_v46 = vadd.f32 %v324_v43, %v321_v42  ;;  %v331_v47 = vrot.slane %v330_v44, 4  ;;  %v4518_v43 = vld [vmem:[#allocation17 + $0x180] ss:$16 sps:$4 sm:$0xff]  }
 0x182   :  { %1016 = vmatpush2.bf16.msra.mxu0 %v4518_v43 }
 0x183   :  { %v326_v48 = vrot.slane %v325_v46, 2  ;;  %v332_v49 = vadd.f32 %v331_v47, %v330_v44  ;;  %v4521_v44 = vld [vmem:[#allocation17 + $0x188] ss:$16 sps:$4 sm:$0xff]   ;;  %v4524_v47 = vld [vmem:[#allocation17 + $0x160] ss:$16 sps:$4 sm:$0xff]   ;;  %1017 = vmatprep.subr.bf16.mxu0 %v4526_v45 }
 0x185   :  { %v327_v50 = vadd.f32 %v326_v48, %v325_v46  ;;  %v333_v51 = vrot.slane %v332_v49, 2  ;;  %v4529_v46 = vld [vmem:[#allocation17 + $0x16c] ss:$16 sps:$4 sm:$0xff]   ;;  %v4527_v48 = vld [vmem:[#allocation17 + $0x168] ss:$16 sps:$4 sm:$0xff]  }
 0x186   :  { %1018 = vmatpush2.bf16.msra.mxu0 %v4524_v47 }
 0x187   :  { %v328_v52 = vrot.slane %v327_v50, 1  ;;  %v334_v53 = vadd.f32 %v333_v51, %v332_v49  ;;  %v4532_v49 = vld [vmem:[#allocation17 + $0x144] ss:$16 sps:$4 sm:$0xff]   ;;  %v4530_v51 = vld [vmem:[#allocation17 + $0x140] ss:$16 sps:$4 sm:$0xff]  }
 0x188   :  { %1019 = vmatprep.subr.bf16.mxu0 %v4532_v49 }
 0x189   :  { %v329_v54 = vadd.f32 %v328_v52, %v327_v50  ;;  %v335_v55 = vrot.slane %v334_v53, 1  ;;  %v4535_v50 = vld [vmem:[#allocation17 + $0x14c] ss:$16 sps:$4 sm:$0xff]   ;;  %v4533_v52 = vld [vmem:[#allocation17 + $0x148] ss:$16 sps:$4 sm:$0xff]  }
 0x18a   :  { %1020 = vmatpush2.bf16.msra.mxu0 %v4530_v51 }
 0x18b   :  { %v336_v56 = vadd.f32 %v335_v55, %v334_v53  ;;  %v337_v57 = vmul.f32 0.125, %v329_v54  ;;  %v4538_v53 = vld [vmem:[#allocation17 + $0x124] ss:$16 sps:$4 sm:$0xff]   ;;  %v4536_v54 = vld [vmem:[#allocation17 + $0x120] ss:$16 sps:$4 sm:$0xff]  }
 0x18c   :  { %v4539_v55 = vld [vmem:[#allocation17 + $0x128] ss:$16 sps:$4 sm:$0xff]   ;;  %1021 = vmatprep.subr.bf16.mxu0 %v4538_v53 }
 0x18d   :  { %v338_v58 = vmul.f32 0.125, %v336_v56  ;;  %v339_v59 = vmul.f32 %v337_v57, %v337_v57  ;;  %v343_v62 = vsub.f32 %v321_v42, %v337_v57  ;;  %v4523_v42 = vld [vmem:[#allocation17 + $0x18c] ss:$16 sps:$4 sm:$0xff]   ;;  %v4544_v57 = vld [vmem:[#allocation17 + $0x104] ss:$16 sps:$4 sm:$0xff]  }
 0x18e   :  { %v4541_v56 = vld [vmem:[#allocation17 + $0x12c] ss:$16 sps:$4 sm:$0xff]   ;;  %1022 = vmatpush2.bf16.msra.mxu0 %v4536_v54 }
 0x18f   :  { %v340_v60 = vsub.f32 %v338_v58, %v339_v59  ;;  %v4547_v58 = vld [vmem:[#allocation17 + $0x10c] ss:$16 sps:$4 sm:$0xff]   ;;  %v4542_v59 = vld [vmem:[#allocation17 + $0x100] ss:$16 sps:$4 sm:$0xff]   ;;  %1023 = vmatprep.subr.bf16.mxu0 %v4544_v57 }
 0x191   :  { %v341_v61 = vadd.f32 1e-05, %v340_v60  ;;  %v4545_v60 = vld [vmem:[#allocation17 + $0x108] ss:$16 sps:$4 sm:$0xff]  }
 0x192   :  { %1024 = vmatpush2.bf16.msra.mxu0 %v4542_v59 }
 0x193   :  { %4612 = vrsqrt.f32 %v341_v61  ;;  %v5060_v61 = vld [vmem:[#allocation19 + $0x1c0] sm:$0xff] }
 0x1a0   :  { %v4613_v63 = vpop.eup %4612 }
 0x1a1   :  { %v344_v1 = vmul.f32 %v4613_v63, %v343_v62  ;;  %v5062_v62 = vld [vmem:[#allocation19 + $0x1e0] sm:$0xff] }
 0x1a2   :  { %v5064_v63 = vld [vmem:[#allocation19 + $0x5c0] sm:$0xff] }
 0x1a3   :  { %v351_v3 = vmul.f32 %v3876_v0, %v344_v1  ;;  %v4014_v0 = vcombine.low %v5060_v61, %v5062_v62  ;;  %v4015_v1 = vcombine.high %v5060_v61, %v5062_v62 }
 0x1a5   :  { %v358_v4 = vadd.f32 %v3877_v2, %v351_v3  ;;  %v5070_v2 = vld [vmem:[#allocation19 + $0x5e0] sm:$0xff]  ;;  %2805 = vmatprep.subr.bf16.mxu0 %v4015_v1 }
 0x1a6   :  { %v4142_v3 = vcombine.low %v5064_v63, %v5070_v2 }
 0x1a7   :  { %v359_v6 = vpack.c.bf16 %v358_v4, %v358_v4  ;;  %v4143_v4 = vcombine.high %v5064_v63, %v5070_v2  ;;  %v1251_v2 = vld [vmem:[#allocation19 + $0xc0] sm:$0xff] }
 0x1a9   :  { %501 = vmatmul.mubr.bf16.vlgmr.msra.gmra.mxu1 %v359_v6 }
 0x1aa   :  { %1035 = vmatpush1.bf16.msra.mxu1 %v4455_v5  ;;  %v378_v5 = vlaneseq }
 0x1ab   :  { %1036 = vmatprep.subr.bf16.mxu1 %v4463_v7 }
 0x1ac   :  { %v5076_v6 = vshrl.u32 %v378_v5, 7 }
 0x1ae   :  { %1037 = vmatpush1.bf16.msra.mxu1 %v4461_v8  ;;  %v5079_v7 = vsub.s32 0, %v5076_v6  ;;  %v376_v8 = vld [vmem:[#allocation13] sm:$0x3] }
 0x1af   :  { %1038 = vmatprep.subr.bf16.mxu1 %v4469_v9  ;;  %v5082_v9 = vsub.s32 1, %v5076_v6 }
 0x1b2   :  { %1039 = vmatpush1.bf16.msra.mxu1 %v4467_v10  ;;  %v381_v10 = vrot.slane %v376_v8, %v5079_v7 }
 0x1b3   :  { %1040 = vmatprep.subr.bf16.mxu1 %v4475_v11  ;;  %v385_v11 = vrot.slane %v376_v8, %v5082_v9 }
 0x1b6   :  { %1041 = vmatpush1.bf16.msra.mxu1 %v4473_v12 }
 0x1b7   :  { %1042 = vmatprep.subr.bf16.mxu1 %v4481_v14 }
 0x1ba   :  { %1043 = vmatpush1.bf16.msra.mxu1 %v4479_v16 }
 0x1bb   :  { %1044 = vmatprep.subr.bf16.mxu1 %v4487_v18 }
 0x1be   :  { %1045 = vmatpush1.bf16.msra.mxu1 %v4485_v20 }
 0x1bf   :  { %1046 = vmatprep.subr.bf16.mxu1 %v4493_v22 }
 0x1c2   :  { %1047 = vmatpush1.bf16.msra.mxu1 %v4491_v24 }
 0x1c3   :  { %1048 = vmatprep.subr.bf16.mxu1 %v4499_v26 }
 0x1c6   :  { %1049 = vmatpush1.bf16.msra.mxu1 %v4497_v28 }
 0x1c7   :  { %1050 = vmatprep.subr.bf16.mxu1 %v4505_v30 }
 0x1ca   :  { %1051 = vmatpush2.bf16.msra.mxu1 %v4503_v32 }
 0x1cb   :  { %1052 = vmatprep.subr.bf16.mxu1 %v4511_v34 }
 0x1ce   :  { %1053 = vmatpush2.bf16.msra.mxu1 %v4509_v36 }
 0x1cf   :  { %1054 = vmatprep.subr.bf16.mxu1 %v4517_v38 }
 0x1d2   :  { %1055 = vmatpush2.bf16.msra.mxu1 %v4515_v40 }
 0x1d3   :  { %1056 = vmatprep.subr.bf16.mxu1 %v4523_v42 }
 0x1d6   :  { %1057 = vmatpush2.bf16.msra.mxu1 %v4521_v44 }
 0x1d7   :  { %1058 = vmatprep.subr.bf16.mxu1 %v4529_v46 }
 0x1da   :  { %1059 = vmatpush2.bf16.msra.mxu1 %v4527_v48 }
 0x1db   :  { %1060 = vmatprep.subr.bf16.mxu1 %v4535_v50 }
 0x1de   :  { %1061 = vmatpush2.bf16.msra.mxu1 %v4533_v52 }
 0x1df   :  { %1062 = vmatprep.subr.bf16.mxu1 %v4541_v56 }
 0x1e2   :  { %1063 = vmatpush2.bf16.msra.mxu1 %v4539_v55 }
 0x1e3   :  { %1064 = vmatprep.subr.bf16.mxu1 %v4547_v58  ;;  %v515_v58 = vld [vmem:[#allocation14] sm:$0x3] }
 0x1e6   :  { %1065 = vmatpush2.bf16.msra.mxu1 %v4545_v60  ;;  %v563_v60 = vrot.slane %v515_v58, %v5079_v7 }
 0x1e7   :  { %2846 = vmatprep.subr.bf16.mxu1 %v4143_v4  ;;  %v516_v4 = vld [vmem:[#allocation16] sm:$0x3] }
 0x269   :  { %v502_v12 = vpop.f32.mrf.mxu1 }
 0x26a   :  { %v503_v13 = vadd.f32 %v502_v12, %v381_v10  ;;  %v567_v10 = vrot.slane %v515_v58, %v5082_v9  ;;  %v576_v12 = vrot.slane %v516_v4, %v5079_v7 }
 0x26b   :  { %v504_v14 = vpop.f32.mrf.mxu1 }
 0x26c   :  { %vm509_vm2 = vcmp.ge.f32.partialorder %v503_v13, 0.0  ;;  %v511_v15 = vmul.f32 0.01, %v503_v13  ;;  %v505_v16 = vadd.f32 %v504_v14, %v385_v11 }
 0x26d   :  { %v506_v17 = vpop.f32.mrf.mxu1 }
 0x26e   :  { %v513_v18 = vsel %vm509_vm2, %v503_v13, %v511_v15  ;;  %vm510_vm3 = vcmp.ge.f32.partialorder %v505_v16, 0.0  ;;  %v512_v19 = vmul.f32 0.01, %v505_v16  ;;  %v580_v15 = vrot.slane %v516_v4, %v5082_v9 }
 0x26f   :  { %v517_v20 = vrot.slane %v513_v18, 4  ;;  %v529_v21 = vmul.f32 %v513_v18, %v513_v18  ;;  %v507_v22 = vpop.f32.mrf.mxu1 }
 0x270   :  { %v514_v23 = vsel %vm510_vm3, %v505_v16, %v512_v19  ;;  %v1275_v19 = vld [vmem:[#allocation19 + $0x180] sm:$0xff] }
 0x271   :  { %v518_v24 = vadd.f32 %v517_v20, %v513_v18  ;;  %v531_v25 = vrot.slane %v529_v21, 4  ;;  %v523_v26 = vrot.slane %v514_v23, 4  ;;  %v530_v27 = vmul.f32 %v514_v23, %v514_v23  ;;  %v1407_v22 = vld [vmem:[#allocation19 + $0x5a0] sm:$0xff] }
 0x273   :  { %v519_v28 = vrot.slane %v518_v24, 2  ;;  %v532_v29 = vadd.f32 %v531_v25, %v529_v21  ;;  %v524_v30 = vadd.f32 %v523_v26, %v514_v23  ;;  %v537_v31 = vrot.slane %v530_v27, 4  ;;  %v1403_v21 = vld [vmem:[#allocation19 + $0x580] sm:$0xff] }
 0x275   :  { %v520_v32 = vadd.f32 %v519_v28, %v518_v24  ;;  %v533_v33 = vrot.slane %v532_v29, 2  ;;  %v525_v34 = vrot.slane %v524_v30, 2  ;;  %v538_v35 = vadd.f32 %v537_v31, %v530_v27  ;;  %v1267_v27 = vld [vmem:[#allocation19 + $0x140] sm:$0xff] }
 0x276   :  { %v1271_v28 = vld [vmem:[#allocation19 + $0x160] sm:$0xff] }
 0x277   :  { %v521_v36 = vrot.slane %v520_v32, 1  ;;  %v534_v37 = vadd.f32 %v533_v33, %v532_v29  ;;  %v526_v38 = vadd.f32 %v525_v34, %v524_v30  ;;  %v539_v39 = vrot.slane %v538_v35, 2  ;;  %v1395_v29 = vld [vmem:[#allocation19 + $0x540] sm:$0xff] }
 0x278   :  { %v1399_v30 = vld [vmem:[#allocation19 + $0x560] sm:$0xff]  ;;  %v3999_v33 = vcombine.high %v1267_v27, %v1271_v28 }
 0x279   :  { %v522_v40 = vadd.f32 %v521_v36, %v520_v32  ;;  %v535_v41 = vrot.slane %v534_v37, 1  ;;  %v527_v42 = vrot.slane %v526_v38, 1  ;;  %v540_v43 = vadd.f32 %v539_v39, %v538_v35  ;;  %v1259_v35 = vld [vmem:[#allocation19 + $0x100] sm:$0xff] }
 0x27a   :  { %v4134_v32 = vcombine.low %v1403_v21, %v1407_v22  ;;  %v4127_v34 = vcombine.high %v1395_v29, %v1399_v30  ;;  %v1263_v36 = vld [vmem:[#allocation19 + $0x120] sm:$0xff]  ;;  %v3998_v39 = vcombine.low %v1267_v27, %v1271_v28 }
 0x27b   :  { %v536_v44 = vadd.f32 %v535_v41, %v534_v37  ;;  %v543_v45 = vmul.f32 0.125, %v522_v40  ;;  %v528_v46 = vadd.f32 %v527_v42, %v526_v38  ;;  %v541_v47 = vrot.slane %v540_v43, 1  ;;  %v1387_v37 = vld [vmem:[#allocation19 + $0x500] sm:$0xff] }
 0x27c   :  { %v1391_v38 = vld [vmem:[#allocation19 + $0x520] sm:$0xff]  ;;  %v4126_v40 = vcombine.low %v1395_v29, %v1399_v30  ;;  %v3991_v61 = vcombine.high %v1259_v35, %v1263_v36  ;;  %v3990_v63 = vcombine.low %v1259_v35, %v1263_v36 }
 0x27d   :  { %v545_v48 = vmul.f32 0.125, %v536_v44  ;;  %v547_v49 = vmul.f32 %v543_v45, %v543_v45  ;;  %v542_v50 = vadd.f32 %v541_v47, %v540_v43  ;;  %v544_v51 = vmul.f32 0.125, %v528_v46  ;;  %v1379_v41 = vld [vmem:[#allocation19 + $0x4c0] sm:$0xff] }
 0x27e   :  { %v555_v59 = vsub.f32 %v513_v18, %v543_v45  ;;  %v1279_v18 = vld [vmem:[#allocation19 + $0x1a0] sm:$0xff]  ;;  %v4119_v62 = vcombine.high %v1387_v37, %v1391_v38 }
 0x27f   :  { %v549_v52 = vsub.f32 %v545_v48, %v547_v49  ;;  %v546_v53 = vmul.f32 0.125, %v542_v50  ;;  %v548_v54 = vmul.f32 %v544_v51, %v544_v51  ;;  %v556_v8 = vsub.f32 %v514_v23, %v544_v51  ;;  %v1383_v43 = vld [vmem:[#allocation19 + $0x4e0] sm:$0xff] }
 0x280   :  { %v4007_v26 = vcombine.high %v1275_v19, %v1279_v18  ;;  %v4135_v23 = vcombine.high %v1403_v21, %v1407_v22  ;;  %v4006_v31 = vcombine.low %v1275_v19, %v1279_v18  ;;  %v4110_v45 = vcombine.low %v1379_v41, %v1383_v43  ;;  %v1243_v47 = vld [vmem:[#allocation19 + $0x80] sm:$0xff] }
 0x281   :  { %v551_v55 = vadd.f32 1e-05, %v549_v52  ;;  %v550_v56 = vsub.f32 %v546_v53, %v548_v54  ;;  %v4111_v46 = vcombine.high %v1379_v41, %v1383_v43  ;;  %v1247_v48 = vld [vmem:[#allocation19 + $0xa0] sm:$0xff] }
 0x282   :  { %v1371_v49 = vld [vmem:[#allocation19 + $0x480] sm:$0xff]  ;;  %v3975_v50 = vcombine.high %v1243_v47, %v1247_v48  ;;  %v3974_v52 = vcombine.low %v1243_v47, %v1247_v48 }
 0x283   :  { %4614 = vrsqrt.f32 %v551_v55  ;;  %v552_v57 = vadd.f32 1e-05, %v550_v56  ;;  %v1375_v51 = vld [vmem:[#allocation19 + $0x4a0] sm:$0xff] }
 0x284   :  { %v4102_v53 = vcombine.low %v1371_v49, %v1375_v51  ;;  %v4103_v54 = vcombine.high %v1371_v49, %v1375_v51  ;;  %v1235_v55 = vld [vmem:[#allocation19 + $0x40] sm:$0xff] }
 0x285   :  { %4616 = vrsqrt.f32 %v552_v57  ;;  %v1239_v56 = vld [vmem:[#allocation19 + $0x60] sm:$0xff] }
 0x286   :  { %v1363_v57 = vld [vmem:[#allocation19 + $0x440] sm:$0xff]  ;;  %v3967_v58 = vcombine.high %v1235_v55, %v1239_v56 }
 0x287   :  { %v1475_v19 = vld [vmem:[#allocation19 + $0x7c0] sm:$0xff] }
 0x288   :  { %v1479_v18 = vld [vmem:[#allocation19 + $0x7e0] sm:$0xff] }
 0x289   :  { %v4206_v22 = vcombine.low %v1475_v19, %v1479_v18  ;;  %v1471_v28 = vld [vmem:[#allocation19 + $0x7a0] sm:$0xff] }
 0x28a   :  { %v1463_v36 = vld [vmem:[#allocation19 + $0x760] sm:$0xff] }
 0x28b   :  { %v1319_v43 = vld [vmem:[#allocation19 + $0x2e0] sm:$0xff] }
 0x28c   :  { %v1311_v51 = vld [vmem:[#allocation19 + $0x2a0] sm:$0xff] }
 0x290   :  { %v4615_v1 = vpop.eup %4614 }
 0x291   :  { %v557_v5 = vmul.f32 %v4615_v1, %v555_v59  ;;  %v1367_v59 = vld [vmem:[#allocation19 + $0x460] sm:$0xff] }
 0x292   :  { %v4617_v11 = vpop.eup %4616  ;;  %v4094_v1 = vcombine.low %v1363_v57, %v1367_v59  ;;  %v4095_v4 = vcombine.high %v1363_v57, %v1367_v59  ;;  %v1303_v59 = vld [vmem:[#allocation19 + $0x260] sm:$0xff] }
 0x293   :  { %v570_v13 = vmul.f32 %v563_v60, %v557_v5  ;;  %v558_v14 = vmul.f32 %v4617_v11, %v556_v8  ;;  %v3966_v60 = vcombine.low %v1235_v55, %v1239_v56  ;;  %v1227_v5 = vld [vmem:[#allocation19] sm:$0xff] }
 0x294   :  { %v1231_v8 = vld [vmem:[#allocation19 + $0x20] sm:$0xff] }
 0x295   :  { %v571_v16 = vmul.f32 %v567_v10, %v558_v14  ;;  %v583_v17 = vadd.f32 %v576_v12, %v570_v13  ;;  %v1355_v10 = vld [vmem:[#allocation19 + $0x400] sm:$0xff]  ;;  %v3959_v11 = vcombine.high %v1227_v5, %v1231_v8  ;;  %v3958_v13 = vcombine.low %v1227_v5, %v1231_v8 }
 0x296   :  { %v1359_v12 = vld [vmem:[#allocation19 + $0x420] sm:$0xff] }
 0x297   :  { %v584_v20 = vadd.f32 %v580_v15, %v571_v16  ;;  %v585_v25 = vpack.c.bf16 %v583_v17, %v583_v17  ;;  %v4086_v14 = vcombine.low %v1355_v10, %v1359_v12  ;;  %v4087_v15 = vcombine.high %v1355_v10, %v1359_v12  ;;  %v1347_v16 = vld [vmem:[#allocation19 + $0x3c0] sm:$0xff] }
 0x298   :  { %v1351_v17 = vld [vmem:[#allocation19 + $0x3e0] sm:$0xff] }
 0x299   :  { %v586_v24 = vpack.c.bf16 %v584_v20, %v584_v20  ;;  %v4079_v20 = vcombine.high %v1347_v16, %v1351_v17  ;;  %v4078_v21 = vcombine.low %v1347_v16, %v1351_v17  ;;  %v1295_v12 = vld [vmem:[#allocation19 + $0x220] sm:$0xff] }
 0x29a   :  { %v1423_v16 = vld [vmem:[#allocation19 + $0x620] sm:$0xff] }
 0x29b   :  { %1025 = vmatprep.mubr.bf16.mxu0 %v586_v24  ;;  %1066 = vmatprep.mubr.bf16.mxu1 %v586_v24  ;;  %v4207_v24 = vcombine.high %v1475_v19, %v1479_v18  ;;  %v5098_v18 = vld [vmem:[#allocation19 + $0x1e8] sm:$0xff] }
 0x29c   :  { %1026 = vmatmul.mubr.bf16.vlgmr.msra.gmra.mxu0 %v585_v25  ;;  %1067 = vmatmul.mubr.bf16.vlgmr.msra.gmra.mxu1 %v585_v25  ;;  %v1339_v25 = vld [vmem:[#allocation19 + $0x380] sm:$0xff] }
 0x29d   :  { %2806 = vmatpush1.bf16.msra.mxu0 %v4014_v0  ;;  %2847 = vmatpush1.bf16.msra.mxu1 %v4142_v3  ;;  %v4118_v0 = vcombine.low %v1387_v37, %v1391_v38  ;;  %v1255_v3 = vld [vmem:[#allocation19 + $0xe0] sm:$0xff] }
 0x29e   :  { %2807 = vmatprep.subr.bf16.mxu0 %v4007_v26  ;;  %2848 = vmatprep.subr.bf16.mxu1 %v4135_v23  ;;  %v3983_v42 = vcombine.high %v1251_v2, %v1255_v3  ;;  %v3982_v44 = vcombine.low %v1251_v2, %v1255_v3  ;;  %v1343_v26 = vld [vmem:[#allocation19 + $0x3a0] sm:$0xff] }
 0x29f   :  { %v1467_v23 = vld [vmem:[#allocation19 + $0x780] sm:$0xff]  ;;  %v4071_v27 = vcombine.high %v1339_v25, %v1343_v26  ;;  %v4070_v29 = vcombine.low %v1339_v25, %v1343_v26 }
 0x2a0   :  { %v4198_v30 = vcombine.low %v1467_v23, %v1471_v28 }
 0x2a1   :  { %2808 = vmatpush1.bf16.msra.mxu0 %v4006_v31  ;;  %2849 = vmatpush1.bf16.msra.mxu1 %v4134_v32  ;;  %v4199_v31 = vcombine.high %v1467_v23, %v1471_v28  ;;  %v1331_v32 = vld [vmem:[#allocation19 + $0x340] sm:$0xff]  ;;  %v651_v28 = vld [vmem:[%s5234_s10] sm:$0xf] }
 0x2a2   :  { %2809 = vmatprep.subr.bf16.mxu0 %v3999_v33  ;;  %2850 = vmatprep.subr.bf16.mxu1 %v4127_v34  ;;  %v1335_v33 = vld [vmem:[#allocation19 + $0x360] sm:$0xff] }
 0x2a3   :  { %v1459_v34 = vld [vmem:[#allocation19 + $0x740] sm:$0xff]  ;;  %v4063_v35 = vcombine.high %v1331_v32, %v1335_v33  ;;  %v4062_v37 = vcombine.low %v1331_v32, %v1335_v33 }
 0x2a4   :  { %v4190_v38 = vcombine.low %v1459_v34, %v1463_v36 }
 0x2a5   :  { %2810 = vmatpush1.bf16.msra.mxu0 %v3998_v39  ;;  %2851 = vmatpush1.bf16.msra.mxu1 %v4126_v40  ;;  %v4191_v39 = vcombine.high %v1459_v34, %v1463_v36  ;;  %v1323_v40 = vld [vmem:[#allocation19 + $0x300] sm:$0xff]  ;;  %v660_v34 = vrot.slane %v651_v28, %v5082_v9 }
 0x2a6   :  { %2811 = vmatprep.subr.bf16.mxu0 %v3991_v61  ;;  %2852 = vmatprep.subr.bf16.mxu1 %v4119_v62  ;;  %v1327_v61 = vld [vmem:[#allocation19 + $0x320] sm:$0xff] }
 0x2a7   :  { %v1451_v62 = vld [vmem:[#allocation19 + $0x700] sm:$0xff]  ;;  %v4054_v2 = vcombine.low %v1323_v40, %v1327_v61 }
 0x2a9   :  { %2812 = vmatpush1.bf16.msra.mxu0 %v3990_v63  ;;  %2853 = vmatpush1.bf16.msra.mxu1 %v4118_v0  ;;  %v4055_v63 = vcombine.high %v1323_v40, %v1327_v61  ;;  %v1455_v0 = vld [vmem:[#allocation19 + $0x720] sm:$0xff] }
 0x2aa   :  { %2813 = vmatprep.subr.bf16.mxu0 %v3983_v42  ;;  %2854 = vmatprep.subr.bf16.mxu1 %v4111_v46  ;;  %v4182_v3 = vcombine.low %v1451_v62, %v1455_v0  ;;  %v4183_v41 = vcombine.high %v1451_v62, %v1455_v0  ;;  %v1315_v42 = vld [vmem:[#allocation19 + $0x2c0] sm:$0xff] }
 0x2ab   :  { %v1447_v46 = vld [vmem:[#allocation19 + $0x6e0] sm:$0xff]  ;;  %v4046_v47 = vcombine.low %v1315_v42, %v1319_v43 }
 0x2ad   :  { %2814 = vmatpush1.bf16.msra.mxu0 %v3982_v44  ;;  %2855 = vmatpush1.bf16.msra.mxu1 %v4110_v45  ;;  %v1443_v44 = vld [vmem:[#allocation19 + $0x6c0] sm:$0xff]  ;;  %v4047_v45 = vcombine.high %v1315_v42, %v1319_v43 }
 0x2ae   :  { %2815 = vmatprep.subr.bf16.mxu0 %v3975_v50  ;;  %2856 = vmatprep.subr.bf16.mxu1 %v4103_v54  ;;  %v4174_v48 = vcombine.low %v1443_v44, %v1447_v46  ;;  %v4175_v49 = vcombine.high %v1443_v44, %v1447_v46  ;;  %v1307_v50 = vld [vmem:[#allocation19 + $0x280] sm:$0xff] }
 0x2af   :  { %v1439_v54 = vld [vmem:[#allocation19 + $0x6a0] sm:$0xff]  ;;  %v4038_v55 = vcombine.low %v1307_v50, %v1311_v51 }
 0x2b1   :  { %2816 = vmatpush1.bf16.msra.mxu0 %v3974_v52  ;;  %2857 = vmatpush1.bf16.msra.mxu1 %v4102_v53  ;;  %v1435_v52 = vld [vmem:[#allocation19 + $0x680] sm:$0xff]  ;;  %v4039_v53 = vcombine.high %v1307_v50, %v1311_v51 }
 0x2b2   :  { %2817 = vmatprep.subr.bf16.mxu0 %v3967_v58  ;;  %2858 = vmatprep.subr.bf16.mxu1 %v4095_v4  ;;  %v4166_v56 = vcombine.low %v1435_v52, %v1439_v54  ;;  %v4167_v57 = vcombine.high %v1435_v52, %v1439_v54  ;;  %v1299_v58 = vld [vmem:[#allocation19 + $0x240] sm:$0xff] }
 0x2b3   :  { %v1431_v4 = vld [vmem:[#allocation19 + $0x660] sm:$0xff]  ;;  %v4030_v5 = vcombine.low %v1299_v58, %v1303_v59 }
 0x2b5   :  { %2818 = vmatpush1.bf16.msra.mxu0 %v3966_v60  ;;  %2859 = vmatpush1.bf16.msra.mxu1 %v4094_v1  ;;  %v1427_v60 = vld [vmem:[#allocation19 + $0x640] sm:$0xff]  ;;  %v4031_v1 = vcombine.high %v1299_v58, %v1303_v59 }
 0x2b6   :  { %2819 = vmatprep.subr.bf16.mxu0 %v3959_v11  ;;  %2860 = vmatprep.subr.bf16.mxu1 %v4087_v15  ;;  %v4158_v8 = vcombine.low %v1427_v60, %v1431_v4  ;;  %v4159_v10 = vcombine.high %v1427_v60, %v1431_v4  ;;  %v1291_v11 = vld [vmem:[#allocation19 + $0x200] sm:$0xff] }
 0x2b7   :  { %v4023_v15 = vcombine.high %v1291_v11, %v1295_v12 }
 0x2b9   :  { %2820 = vmatpush1.bf16.msra.mxu0 %v3958_v13  ;;  %2861 = vmatpush1.bf16.msra.mxu1 %v4086_v14  ;;  %v1419_v13 = vld [vmem:[#allocation19 + $0x600] sm:$0xff]  ;;  %v4022_v14 = vcombine.low %v1291_v11, %v1295_v12 }
 0x2ba   :  { %2821 = vmatprep.subr.bf16.mxu0 %v4079_v20  ;;  %2862 = vmatprep.subr.bf16.mxu1 %v4207_v24  ;;  %v4150_v17 = vcombine.low %v1419_v13, %v1423_v16  ;;  %v4151_v19 = vcombine.high %v1419_v13, %v1423_v16  ;;  %v5096_v20 = vld [vmem:[#allocation19 + $0x1c8] sm:$0xff] }
 0x2bb   :  { %v5104_v24 = vld [vmem:[#allocation19 + $0x5e8] sm:$0xff]  ;;  %v4016_v25 = vcombine.low %v5096_v20, %v5098_v18 }
 0x2bd   :  { %2822 = vmatpush2.bf16.msra.mxu0 %v4078_v21  ;;  %2863 = vmatpush2.bf16.msra.mxu1 %v4206_v22  ;;  %v5100_v21 = vld [vmem:[#allocation19 + $0x5c8] sm:$0xff]  ;;  %v4017_v22 = vcombine.high %v5096_v20, %v5098_v18 }
 0x2be   :  { %2823 = vmatprep.subr.bf16.mxu0 %v4071_v27  ;;  %2864 = vmatprep.subr.bf16.mxu1 %v4199_v31  ;;  %v4144_v26 = vcombine.low %v5100_v21, %v5104_v24  ;;  %v4145_v23 = vcombine.high %v5100_v21, %v5104_v24  ;;  %v5113_v27 = vsub.s32 2, %v5076_v6 }
 0x2c0   :  { %v664_v31 = vrot.slane %v651_v28, %v5113_v27 }
 0x2c1   :  { %2824 = vmatpush2.bf16.msra.mxu0 %v4070_v29  ;;  %2865 = vmatpush2.bf16.msra.mxu1 %v4198_v30  ;;  %v5119_v29 = vsub.s32 3, %v5076_v6  ;;  %v656_v30 = vrot.slane %v651_v28, %v5079_v7 }
 0x2c2   :  { %2825 = vmatprep.subr.bf16.mxu0 %v4063_v35  ;;  %2866 = vmatprep.subr.bf16.mxu1 %v4191_v39 }
 0x2c3   :  { %v668_v35 = vrot.slane %v651_v28, %v5119_v29 }
 0x2c5   :  { %2826 = vmatpush2.bf16.msra.mxu0 %v4062_v37  ;;  %2867 = vmatpush2.bf16.msra.mxu1 %v4190_v38 }
 0x2c6   :  { %2827 = vmatprep.subr.bf16.mxu0 %v4055_v63  ;;  %2868 = vmatprep.subr.bf16.mxu1 %v4183_v41 }
 0x2c9   :  { %2828 = vmatpush2.bf16.msra.mxu0 %v4054_v2  ;;  %2869 = vmatpush2.bf16.msra.mxu1 %v4182_v3 }
 0x2ca   :  { %2829 = vmatprep.subr.bf16.mxu0 %v4047_v45  ;;  %2870 = vmatprep.subr.bf16.mxu1 %v4175_v49 }
 0x2cd   :  { %2830 = vmatpush2.bf16.msra.mxu0 %v4046_v47  ;;  %2871 = vmatpush2.bf16.msra.mxu1 %v4174_v48 }
 0x2ce   :  { %2831 = vmatprep.subr.bf16.mxu0 %v4039_v53  ;;  %2872 = vmatprep.subr.bf16.mxu1 %v4167_v57 }
 0x2d1   :  { %2832 = vmatpush2.bf16.msra.mxu0 %v4038_v55  ;;  %2873 = vmatpush2.bf16.msra.mxu1 %v4166_v56 }
 0x2d2   :  { %2833 = vmatprep.subr.bf16.mxu0 %v4031_v1  ;;  %2874 = vmatprep.subr.bf16.mxu1 %v4159_v10 }
 0x2d5   :  { %2834 = vmatpush2.bf16.msra.mxu0 %v4030_v5  ;;  %2875 = vmatpush2.bf16.msra.mxu1 %v4158_v8 }
 0x2d6   :  { %2835 = vmatprep.subr.bf16.mxu0 %v4023_v15  ;;  %2876 = vmatprep.subr.bf16.mxu1 %v4151_v19 }
 0x2d9   :  { %2836 = vmatpush2.bf16.msra.mxu0 %v4022_v14  ;;  %2877 = vmatpush2.bf16.msra.mxu1 %v4150_v17 }
 0x2da   :  { %2887 = vmatprep.subr.bf16.mxu0 %v4017_v22  ;;  %2928 = vmatprep.subr.bf16.mxu1 %v4145_v23 }
 0x35c   :  { %v1027_v32 = vpop.f32.mrf.mxu0  ;;  %v1068_v33 = vpop.f32.mrf.mxu1 }
 0x35d   :  { %v1028_v36 = vadd.f32 %v1027_v32, %v656_v30  ;;  %v1069_v37 = vadd.f32 %v1068_v33, %v664_v31 }
 0x35e   :  { %v1029_v38 = vpop.f32.mrf.mxu0  ;;  %v1070_v39 = vpop.f32.mrf.mxu1 }
 0x35f   :  { %vm1075_vm4 = vcmp.ge.f32.partialorder %v1028_v36, 0.0  ;;  %v1079_v40 = vmul.f32 0.01, %v1028_v36  ;;  %vm1077_vm5 = vcmp.ge.f32.partialorder %v1069_v37, 0.0  ;;  %v1081_v61 = vmul.f32 0.01, %v1069_v37 }
 0x360   :  { %v1030_v62 = vadd.f32 %v1029_v38, %v660_v34  ;;  %v1071_v63 = vadd.f32 %v1070_v39, %v668_v35  ;;  %v1031_v0 = vpop.f32.mrf.mxu0  ;;  %v1072_v2 = vpop.f32.mrf.mxu1 }
 0x361   :  { %v5125_v3 = vsel %vm1075_vm4, %v1028_v36, %v1079_v40  ;;  %v5127_v41 = vsel %vm1077_vm5, %v1069_v37, %v1081_v61 }
 0x362   :  { %v1089_v42 = vrot.slane %v5125_v3, 4  ;;  %v1113_v43 = vmul.f32 %v5125_v3, %v5125_v3  ;;  %v1101_v44 = vrot.slane %v5127_v41, 4  ;;  %v1115_v45 = vmul.f32 %v5127_v41, %v5127_v41  ;;  %v1032_v46 = vpop.f32.mrf.mxu0  ;;  %v1073_v47 = vpop.f32.mrf.mxu1 }
 0x363   :  { %vm1076_vm6 = vcmp.ge.f32.partialorder %v1030_v62, 0.0  ;;  %v1080_v48 = vmul.f32 0.01, %v1030_v62  ;;  %vm1078_vm7 = vcmp.ge.f32.partialorder %v1071_v63, 0.0  ;;  %v1082_v49 = vmul.f32 0.01, %v1071_v63 }
 0x364   :  { %v1090_v50 = vadd.f32 %v1089_v42, %v5125_v3  ;;  %v1117_v51 = vrot.slane %v1113_v43, 4  ;;  %v1102_v52 = vadd.f32 %v1101_v44, %v5127_v41  ;;  %v1129_v53 = vrot.slane %v1115_v45, 4 }
 0x365   :  { %v5137_v54 = vsel %vm1076_vm6, %v1030_v62, %v1080_v48  ;;  %v5139_v55 = vsel %vm1078_vm7, %v1071_v63, %v1082_v49 }
 0x366   :  { %v1091_v56 = vrot.slane %v1090_v50, 2  ;;  %v1118_v57 = vadd.f32 %v1117_v51, %v1113_v43  ;;  %v1103_v58 = vrot.slane %v1102_v52, 2  ;;  %v1130_v59 = vadd.f32 %v1129_v53, %v1115_v45 }
 0x367   :  { %v1095_v60 = vrot.slane %v5137_v54, 4  ;;  %v1114_v1 = vmul.f32 %v5137_v54, %v5137_v54  ;;  %v1107_v4 = vrot.slane %v5139_v55, 4  ;;  %v1116_v5 = vmul.f32 %v5139_v55, %v5139_v55 }
 0x368   :  { %v1092_v8 = vadd.f32 %v1091_v56, %v1090_v50  ;;  %v1119_v10 = vrot.slane %v1118_v57, 2  ;;  %v1104_v11 = vadd.f32 %v1103_v58, %v1102_v52  ;;  %v1131_v12 = vrot.slane %v1130_v59, 2 }
 0x369   :  { %v1096_v13 = vadd.f32 %v1095_v60, %v5137_v54  ;;  %v1123_v14 = vrot.slane %v1114_v1, 4  ;;  %v1108_v15 = vadd.f32 %v1107_v4, %v5139_v55  ;;  %v1135_v16 = vrot.slane %v1116_v5, 4 }
 0x36a   :  { %v1093_v17 = vrot.slane %v1092_v8, 1  ;;  %v1120_v19 = vadd.f32 %v1119_v10, %v1118_v57  ;;  %v1105_v22 = vrot.slane %v1104_v11, 1  ;;  %v1132_v23 = vadd.f32 %v1131_v12, %v1130_v59 }
 0x36b   :  { %v1097_v28 = vrot.slane %v1096_v13, 2  ;;  %v1124_v30 = vadd.f32 %v1123_v14, %v1114_v1  ;;  %v1109_v31 = vrot.slane %v1108_v15, 2  ;;  %v1136_v32 = vadd.f32 %v1135_v16, %v1116_v5  ;;  %v1087_v16 = vld [vmem:[%s5235_s11] sm:$0xf] }
 0x36c   :  { %v1094_v33 = vadd.f32 %v1093_v17, %v1092_v8  ;;  %v1121_v34 = vrot.slane %v1120_v19, 1  ;;  %v1106_v35 = vadd.f32 %v1105_v22, %v1104_v11  ;;  %v1133_v36 = vrot.slane %v1132_v23, 1 }
 0x36d   :  { %v1098_v37 = vadd.f32 %v1097_v28, %v1096_v13  ;;  %v1125_v38 = vrot.slane %v1124_v30, 2  ;;  %v1110_v39 = vadd.f32 %v1109_v31, %v1108_v15  ;;  %v1137_v40 = vrot.slane %v1136_v32, 2 }
 0x36e   :  { %v1122_v61 = vadd.f32 %v1121_v34, %v1120_v19  ;;  %v1141_v62 = vmul.f32 0.125, %v1094_v33  ;;  %v1134_v63 = vadd.f32 %v1133_v36, %v1132_v23  ;;  %v1143_v0 = vmul.f32 0.125, %v1106_v35 }
 0x36f   :  { %v1099_v2 = vrot.slane %v1098_v37, 1  ;;  %v1126_v42 = vadd.f32 %v1125_v38, %v1124_v30  ;;  %v1111_v43 = vrot.slane %v1110_v39, 1  ;;  %v1138_v44 = vadd.f32 %v1137_v40, %v1136_v32  ;;  %v1088_v32 = vld [vmem:[%s5236_s12] sm:$0xf] }
 0x370   :  { %v1145_v45 = vmul.f32 0.125, %v1122_v61  ;;  %v1149_v46 = vmul.f32 %v1141_v62, %v1141_v62  ;;  %v1147_v47 = vmul.f32 0.125, %v1134_v63  ;;  %v1151_v48 = vmul.f32 %v1143_v0, %v1143_v0 }
 0x371   :  { %v1100_v49 = vadd.f32 %v1099_v2, %v1098_v37  ;;  %v1127_v50 = vrot.slane %v1126_v42, 1  ;;  %v1112_v52 = vadd.f32 %v1111_v43, %v1110_v39  ;;  %v1139_v53 = vrot.slane %v1138_v44, 1 }
 0x372   :  { %v1153_v51 = vsub.f32 %v1145_v45, %v1149_v46  ;;  %v1155_v56 = vsub.f32 %v1147_v47, %v1151_v48  ;;  %v1165_v17 = vsub.f32 %v5125_v3, %v1141_v62  ;;  %v1167_v22 = vsub.f32 %v5127_v41, %v1143_v0  ;;  %v1276_v46 = vld [vmem:[#allocation19 + $0x188] sm:$0xff] }
 0x373   :  { %v1128_v57 = vadd.f32 %v1127_v50, %v1126_v42  ;;  %v1142_v58 = vmul.f32 0.125, %v1100_v49  ;;  %v1140_v60 = vadd.f32 %v1139_v53, %v1138_v44  ;;  %v1144_v1 = vmul.f32 0.125, %v1112_v52  ;;  %v1280_v47 = vld [vmem:[#allocation19 + $0x1a8] sm:$0xff] }
 0x374   :  { %v1157_v59 = vadd.f32 1e-05, %v1153_v51  ;;  %v1159_v4 = vadd.f32 1e-05, %v1155_v56  ;;  %v1177_v30 = vrot.slane %v1087_v16, %v5079_v7  ;;  %v1185_v33 = vrot.slane %v1087_v16, %v5113_v27  ;;  %v1404_v49 = vld [vmem:[#allocation19 + $0x588] sm:$0xff] }
 0x375   :  { %v1146_v5 = vmul.f32 0.125, %v1128_v57  ;;  %v1150_v8 = vmul.f32 %v1142_v58, %v1142_v58  ;;  %v1148_v10 = vmul.f32 0.125, %v1140_v60  ;;  %v1152_v11 = vmul.f32 %v1144_v1, %v1144_v1  ;;  %v1408_v50 = vld [vmem:[#allocation19 + $0x5a8] sm:$0xff] }
 0x376   :  { %4618 = vrsqrt.f32 %v1157_v59  ;;  %v1166_v34 = vsub.f32 %v5137_v54, %v1142_v58  ;;  %v1181_v35 = vrot.slane %v1087_v16, %v5082_v9  ;;  %v1168_v3 = vsub.f32 %v5139_v55, %v1144_v1  ;;  %v1268_v57 = vld [vmem:[#allocation19 + $0x148] sm:$0xff] }
 0x377   :  { %4620 = vrsqrt.f32 %v1159_v4  ;;  %v1154_v12 = vsub.f32 %v1146_v5, %v1150_v8  ;;  %v1156_v13 = vsub.f32 %v1148_v10, %v1152_v11  ;;  %v1189_v41 = vrot.slane %v1087_v16, %v5119_v29  ;;  %v1272_v58 = vld [vmem:[#allocation19 + $0x168] sm:$0xff] }
 0x378   :  { %v1202_v38 = vrot.slane %v1088_v32, %v5079_v7  ;;  %v1206_v61 = vrot.slane %v1088_v32, %v5082_v9  ;;  %v1210_v63 = vrot.slane %v1088_v32, %v5113_v27  ;;  %v1214_v54 = vrot.slane %v1088_v32, %v5119_v29  ;;  %v1396_v60 = vld [vmem:[#allocation19 + $0x548] sm:$0xff] }
 0x379   :  { %v1158_v14 = vadd.f32 1e-05, %v1154_v12  ;;  %v1160_v15 = vadd.f32 1e-05, %v1156_v13  ;;  %v4009_v56 = vcombine.high %v1276_v46, %v1280_v47  ;;  %v4137_v59 = vcombine.high %v1404_v49, %v1408_v50  ;;  %v1400_v1 = vld [vmem:[#allocation19 + $0x568] sm:$0xff] }
 0x37a   :  { %v4008_v4 = vcombine.low %v1276_v46, %v1280_v47  ;;  %v4136_v5 = vcombine.low %v1404_v49, %v1408_v50  ;;  %v4001_v8 = vcombine.high %v1268_v57, %v1272_v58  ;;  %v4129_v10 = vcombine.high %v1396_v60, %v1400_v1  ;;  %v1260_v11 = vld [vmem:[#allocation19 + $0x108] sm:$0xff] }
 0x37b   :  { %4622 = vrsqrt.f32 %v1158_v14  ;;  %v1264_v12 = vld [vmem:[#allocation19 + $0x128] sm:$0xff]  ;;  %v4000_v20 = vcombine.low %v1268_v57, %v1272_v58  ;;  %v4128_v18 = vcombine.low %v1396_v60, %v1400_v1 }
 0x37c   :  { %4624 = vrsqrt.f32 %v1160_v15  ;;  %v1388_v13 = vld [vmem:[#allocation19 + $0x508] sm:$0xff]  ;;  %v3993_v21 = vcombine.high %v1260_v11, %v1264_v12 }
 0x37d   :  { %v1392_v14 = vld [vmem:[#allocation19 + $0x528] sm:$0xff] }
 0x37e   :  { %v4121_v24 = vcombine.high %v1388_v13, %v1392_v14  ;;  %v1380_v15 = vld [vmem:[#allocation19 + $0x4c8] sm:$0xff] }
 0x37f   :  { %v1384_v16 = vld [vmem:[#allocation19 + $0x4e8] sm:$0xff] }
 0x380   :  { %v1376_v32 = vld [vmem:[#allocation19 + $0x4a8] sm:$0xff] }
 0x381   :  { %v1352_v46 = vld [vmem:[#allocation19 + $0x3e8] sm:$0xff] }
 0x382   :  { %v1476_v47 = vld [vmem:[#allocation19 + $0x7c8] sm:$0xff] }
 0x383   :  { %v4619_v19 = vpop.eup %4618  ;;  %v1480_v49 = vld [vmem:[#allocation19 + $0x7e8] sm:$0xff] }
 0x384   :  { %v4621_v23 = vpop.eup %4620  ;;  %v1169_v28 = vmul.f32 %v4619_v19, %v1165_v17  ;;  %v3992_v17 = vcombine.low %v1260_v11, %v1264_v12  ;;  %v4120_v19 = vcombine.low %v1388_v13, %v1392_v14  ;;  %v4209_v58 = vcombine.high %v1476_v47, %v1480_v49  ;;  %v1344_v60 = vld [vmem:[#allocation19 + $0x3a8] sm:$0xff] }
 0x385   :  { %v1171_v31 = vmul.f32 %v4621_v23, %v1167_v22  ;;  %v4113_v23 = vcombine.high %v1380_v15, %v1384_v16  ;;  %v1468_v1 = vld [vmem:[#allocation19 + $0x788] sm:$0xff] }
 0x386   :  { %v1194_v37 = vmul.f32 %v1177_v30, %v1169_v28  ;;  %v1244_v28 = vld [vmem:[#allocation19 + $0x88] sm:$0xff] }
 0x387   :  { %v1196_v62 = vmul.f32 %v1185_v33, %v1171_v31  ;;  %v1248_v30 = vld [vmem:[#allocation19 + $0xa8] sm:$0xff] }
 0x388   :  { %v4623_v36 = vpop.eup %4622  ;;  %v1219_v43 = vadd.f32 %v1202_v38, %v1194_v37  ;;  %v1372_v31 = vld [vmem:[#allocation19 + $0x488] sm:$0xff] }
 0x389   :  { %v4625_v39 = vpop.eup %4624  ;;  %v1170_v40 = vmul.f32 %v4623_v36, %v1166_v34  ;;  %v1221_v55 = vadd.f32 %v1210_v63, %v1196_v62  ;;  %v4112_v34 = vcombine.low %v1380_v15, %v1384_v16  ;;  %v4105_v36 = vcombine.high %v1372_v31, %v1376_v32  ;;  %v1364_v37 = vld [vmem:[#allocation19 + $0x448] sm:$0xff] }
 0x38a   :  { %v1172_v0 = vmul.f32 %v4625_v39, %v1168_v3  ;;  %v5171_v52 = vpack.c.bf16 %v1219_v43, %v1219_v43  ;;  %v1236_v3 = vld [vmem:[#allocation19 + $0x48] sm:$0xff]  ;;  %v3976_v39 = vcombine.low %v1244_v28, %v1248_v30 }
 0x38b   :  { %v1195_v2 = vmul.f32 %v1181_v35, %v1170_v40  ;;  %v5174_v53 = vpack.c.bf16 %v1221_v55, %v1221_v55  ;;  %v3977_v35 = vcombine.high %v1244_v28, %v1248_v30  ;;  %v1368_v38 = vld [vmem:[#allocation19 + $0x468] sm:$0xff]  ;;  %v4104_v40 = vcombine.low %v1372_v31, %v1376_v32 }
 0x38c   :  { %v1197_v42 = vmul.f32 %v1189_v41, %v1172_v0  ;;  %v1240_v41 = vld [vmem:[#allocation19 + $0x68] sm:$0xff]  ;;  %v4097_v62 = vcombine.high %v1364_v37, %v1368_v38  ;;  %v4096_v43 = vcombine.low %v1364_v37, %v1368_v38 }
 0x38d   :  { %v1220_v44 = vadd.f32 %v1206_v61, %v1195_v2  ;;  %v3969_v61 = vcombine.high %v1236_v3, %v1240_v41  ;;  %v1228_v63 = vld [vmem:[#allocation19 + $0x8] sm:$0xff] }
 0x38e   :  { %v1222_v45 = vadd.f32 %v1214_v54, %v1197_v42  ;;  %v1232_v0 = vld [vmem:[#allocation19 + $0x28] sm:$0xff]  ;;  %v3968_v42 = vcombine.low %v1236_v3, %v1240_v41 }
 0x38f   :  { %v5167_v48 = vpack.c.bf16 %v1220_v44, %v1220_v44  ;;  %v1356_v54 = vld [vmem:[#allocation19 + $0x408] sm:$0xff]  ;;  %v3961_v44 = vcombine.high %v1228_v63, %v1232_v0  ;;  %v3960_v50 = vcombine.low %v1228_v63, %v1232_v0 }
 0x390   :  { %v5169_v51 = vpack.c.bf16 %v1222_v45, %v1222_v45  ;;  %v1360_v2 = vld [vmem:[#allocation19 + $0x428] sm:$0xff] }
 0x391   :  { %2837 = vmatprep.mubr.bf16.mxu0 %v5167_v48  ;;  %v4089_v55 = vcombine.high %v1356_v54, %v1360_v2  ;;  %v1348_v45 = vld [vmem:[#allocation19 + $0x3c8] sm:$0xff] }
 0x392   :  { %2878 = vmatprep.mubr.bf16.mxu1 %v5169_v51  ;;  %2838 = vmatmul.mubr.bf16.vlgmr.msra.gmra.mxu0 %v5171_v52  ;;  %v4081_v57 = vcombine.high %v1348_v45, %v1352_v46  ;;  %v1332_v12 = vld [vmem:[#allocation19 + $0x348] sm:$0xff] }
 0x393   :  { %2879 = vmatmul.mubr.bf16.vlgmr.msra.gmra.mxu1 %v5174_v53  ;;  %2888 = vmatpush1.bf16.msra.mxu0 %v4016_v25  ;;  %v1252_v25 = vld [vmem:[#allocation19 + $0xc8] sm:$0xff] }
 0x394   :  { %2929 = vmatpush1.bf16.msra.mxu1 %v4144_v26  ;;  %2919 = vmatprep.mubr.bf16.mxu0 %v5167_v48  ;;  %v1256_v26 = vld [vmem:[#allocation19 + $0xe8] sm:$0xff] }
 0x395   :  { %2960 = vmatprep.mubr.bf16.mxu1 %v5169_v51  ;;  %2889 = vmatprep.subr.bf16.mxu0 %v4009_v56  ;;  %v3985_v22 = vcombine.high %v1252_v25, %v1256_v26  ;;  %v3984_v33 = vcombine.low %v1252_v25, %v1256_v26  ;;  %v4088_v56 = vcombine.low %v1356_v54, %v1360_v2  ;;  %v1336_v13 = vld [vmem:[#allocation19 + $0x368] sm:$0xff] }
 0x396   :  { %2930 = vmatprep.subr.bf16.mxu1 %v4137_v59  ;;  %v1340_v59 = vld [vmem:[#allocation19 + $0x388] sm:$0xff] }
 0x397   :  { %2890 = vmatpush1.bf16.msra.mxu0 %v4008_v4  ;;  %v1472_v4 = vld [vmem:[#allocation19 + $0x7a8] sm:$0xff] }
 0x398   :  { %2931 = vmatpush1.bf16.msra.mxu1 %v4136_v5  ;;  %2891 = vmatprep.subr.bf16.mxu0 %v4001_v8  ;;  %v4080_v5 = vcombine.low %v1348_v45, %v1352_v46  ;;  %v4208_v8 = vcombine.low %v1476_v47, %v1480_v49  ;;  %v4201_v11 = vcombine.high %v1468_v1, %v1472_v4  ;;  %v1460_v14 = vld [vmem:[#allocation19 + $0x748] sm:$0xff] }
 0x399   :  { %2932 = vmatprep.subr.bf16.mxu1 %v4129_v10  ;;  %v4073_v10 = vcombine.high %v1340_v59, %v1344_v60  ;;  %v1324_v26 = vld [vmem:[#allocation19 + $0x308] sm:$0xff] }
 0x39a   :  { %v1328_v15 = vld [vmem:[#allocation19 + $0x328] sm:$0xff] }
 0x39b   :  { %2892 = vmatpush1.bf16.msra.mxu0 %v4000_v20  ;;  %v1464_v20 = vld [vmem:[#allocation19 + $0x768] sm:$0xff] }
 0x39c   :  { %2933 = vmatpush1.bf16.msra.mxu1 %v4128_v18  ;;  %2893 = vmatprep.subr.bf16.mxu0 %v3993_v21  ;;  %v4072_v18 = vcombine.low %v1340_v59, %v1344_v60  ;;  %v4200_v21 = vcombine.low %v1468_v1, %v1472_v4  ;;  %v4193_v25 = vcombine.high %v1460_v14, %v1464_v20  ;;  %v1452_v16 = vld [vmem:[#allocation19 + $0x708] sm:$0xff]  ;;  %v1285_v60 = vld [vmem:[#allocation19 + $0x1d0] sm:$0xff] }
 0x39d   :  { %2934 = vmatprep.subr.bf16.mxu1 %v4121_v24  ;;  %v4065_v24 = vcombine.high %v1332_v12, %v1336_v13  ;;  %v1316_v30 = vld [vmem:[#allocation19 + $0x2c8] sm:$0xff]  ;;  %v1289_v1 = vld [vmem:[#allocation19 + $0x1f0] sm:$0xff] }
 0x39e   :  { %v1320_v31 = vld [vmem:[#allocation19 + $0x2e8] sm:$0xff]  ;;  %v1413_v4 = vld [vmem:[#allocation19 + $0x5d0] sm:$0xff] }
 0x39f   :  { %2894 = vmatpush1.bf16.msra.mxu0 %v3992_v17  ;;  %v1456_v17 = vld [vmem:[#allocation19 + $0x728] sm:$0xff] }
 0x3a0   :  { %2935 = vmatpush1.bf16.msra.mxu1 %v4120_v19  ;;  %2895 = vmatprep.subr.bf16.mxu0 %v3985_v22  ;;  %v4064_v19 = vcombine.low %v1332_v12, %v1336_v13  ;;  %v4192_v22 = vcombine.low %v1460_v14, %v1464_v20  ;;  %v4185_v28 = vcombine.high %v1452_v16, %v1456_v17  ;;  %v1444_v32 = vld [vmem:[#allocation19 + $0x6c8] sm:$0xff]  ;;  %v1277_v13 = vld [vmem:[#allocation19 + $0x190] sm:$0xff] }
 0x3a1   :  { %2936 = vmatprep.subr.bf16.mxu1 %v4113_v23  ;;  %v4057_v23 = vcombine.high %v1324_v26, %v1328_v15  ;;  %v1308_v41 = vld [vmem:[#allocation19 + $0x288] sm:$0xff]  ;;  %v1281_v14 = vld [vmem:[#allocation19 + $0x1b0] sm:$0xff]  ;;  %v4018_v20 = vcombine.low %v1285_v60, %v1289_v1 }
 0x3a2   :  { %v1312_v37 = vld [vmem:[#allocation19 + $0x2a8] sm:$0xff] }
 0x3a3   :  { %2896 = vmatpush1.bf16.msra.mxu0 %v3984_v33  ;;  %v1448_v33 = vld [vmem:[#allocation19 + $0x6e8] sm:$0xff] }
 0x3a4   :  { %2937 = vmatpush1.bf16.msra.mxu1 %v4112_v34  ;;  %2897 = vmatprep.subr.bf16.mxu0 %v3977_v35  ;;  %v4056_v34 = vcombine.low %v1324_v26, %v1328_v15  ;;  %v4184_v35 = vcombine.low %v1452_v16, %v1456_v17  ;;  %v4177_v3 = vcombine.high %v1444_v32, %v1448_v33  ;;  %v1436_v38 = vld [vmem:[#allocation19 + $0x688] sm:$0xff]  ;;  %v1269_v26 = vld [vmem:[#allocation19 + $0x150] sm:$0xff] }
 0x3a5   :  { %2938 = vmatprep.subr.bf16.mxu1 %v4105_v36  ;;  %v4049_v36 = vcombine.high %v1316_v30, %v1320_v31  ;;  %v1300_v0 = vld [vmem:[#allocation19 + $0x248] sm:$0xff]  ;;  %v1273_v15 = vld [vmem:[#allocation19 + $0x170] sm:$0xff] }
 0x3a6   :  { %v1304_v54 = vld [vmem:[#allocation19 + $0x268] sm:$0xff]  ;;  %v1397_v17 = vld [vmem:[#allocation19 + $0x550] sm:$0xff] }
 0x3a7   :  { %2898 = vmatpush1.bf16.msra.mxu0 %v3976_v39  ;;  %v1440_v39 = vld [vmem:[#allocation19 + $0x6a8] sm:$0xff] }
 0x3a8   :  { %2939 = vmatpush1.bf16.msra.mxu1 %v4104_v40  ;;  %2899 = vmatprep.subr.bf16.mxu0 %v3969_v61  ;;  %v4048_v40 = vcombine.low %v1316_v30, %v1320_v31  ;;  %v4176_v61 = vcombine.low %v1444_v32, %v1448_v33  ;;  %v4169_v63 = vcombine.high %v1436_v38, %v1440_v39  ;;  %v1428_v2 = vld [vmem:[#allocation19 + $0x648] sm:$0xff]  ;;  %v1261_v31 = vld [vmem:[#allocation19 + $0x110] sm:$0xff] }
 0x3a9   :  { %2940 = vmatprep.subr.bf16.mxu1 %v4097_v62  ;;  %v4041_v62 = vcombine.high %v1308_v41, %v1312_v37  ;;  %v1292_v46 = vld [vmem:[#allocation19 + $0x208] sm:$0xff]  ;;  %v1265_v32 = vld [vmem:[#allocation19 + $0x130] sm:$0xff] }
 0x3aa   :  { %v1296_v47 = vld [vmem:[#allocation19 + $0x228] sm:$0xff]  ;;  %v1389_v33 = vld [vmem:[#allocation19 + $0x510] sm:$0xff] }
 0x3ab   :  { %2900 = vmatpush1.bf16.msra.mxu0 %v3968_v42  ;;  %v1432_v42 = vld [vmem:[#allocation19 + $0x668] sm:$0xff] }
 0x3ac   :  { %2941 = vmatpush1.bf16.msra.mxu1 %v4096_v43  ;;  %2901 = vmatprep.subr.bf16.mxu0 %v3961_v44  ;;  %v4040_v43 = vcombine.low %v1308_v41, %v1312_v37  ;;  %v4168_v44 = vcombine.low %v1436_v38, %v1440_v39  ;;  %v4161_v45 = vcombine.high %v1428_v2, %v1432_v42  ;;  %v1420_v49 = vld [vmem:[#allocation19 + $0x608] sm:$0xff]  ;;  %v1253_v37 = vld [vmem:[#allocation19 + $0xd0] sm:$0xff] }
 0x3ad   :  { %2942 = vmatprep.subr.bf16.mxu1 %v4089_v55  ;;  %v4033_v55 = vcombine.high %v1300_v0, %v1304_v54  ;;  %v1257_v38 = vld [vmem:[#allocation19 + $0xf0] sm:$0xff] }
 0x3ae   :  { %v1381_v39 = vld [vmem:[#allocation19 + $0x4d0] sm:$0xff] }
 0x3af   :  { %2902 = vmatpush1.bf16.msra.mxu0 %v3960_v50  ;;  %v1424_v50 = vld [vmem:[#allocation19 + $0x628] sm:$0xff] }
 0x3b0   :  { %2943 = vmatpush1.bf16.msra.mxu1 %v4088_v56  ;;  %2903 = vmatprep.subr.bf16.mxu0 %v4081_v57  ;;  %v4032_v56 = vcombine.low %v1300_v0, %v1304_v54  ;;  %v4160_v57 = vcombine.low %v1428_v2, %v1432_v42  ;;  %v4153_v59 = vcombine.high %v1420_v49, %v1424_v50  ;;  %v1245_v54 = vld [vmem:[#allocation19 + $0x90] sm:$0xff] }
 0x3b1   :  { %2944 = vmatprep.subr.bf16.mxu1 %v4209_v58  ;;  %v4025_v58 = vcombine.high %v1292_v46, %v1296_v47  ;;  %v1249_v2 = vld [vmem:[#allocation19 + $0xb0] sm:$0xff] }
 0x3b2   :  { %v1373_v42 = vld [vmem:[#allocation19 + $0x490] sm:$0xff] }
 0x3b3   :  { %2904 = vmatpush2.bf16.msra.mxu0 %v4080_v5  ;;  %v1417_v5 = vld [vmem:[#allocation19 + $0x5f0] sm:$0xff] }
 0x3b4   :  { %2945 = vmatpush2.bf16.msra.mxu1 %v4208_v8  ;;  %2905 = vmatprep.subr.bf16.mxu0 %v4073_v10  ;;  %v4024_v8 = vcombine.low %v1292_v46, %v1296_v47  ;;  %v4152_v10 = vcombine.low %v1420_v49, %v1424_v50  ;;  %v4147_v12 = vcombine.high %v1413_v4, %v1417_v5  ;;  %v1237_v47 = vld [vmem:[#allocation19 + $0x50] sm:$0xff] }
 0x3b5   :  { %2946 = vmatprep.subr.bf16.mxu1 %v4201_v11  ;;  %v4019_v11 = vcombine.high %v1285_v60, %v1289_v1  ;;  %v1241_v49 = vld [vmem:[#allocation19 + $0x70] sm:$0xff] }
 0x3b6   :  { %v1365_v50 = vld [vmem:[#allocation19 + $0x450] sm:$0xff] }
 0x3b7   :  { %2906 = vmatpush2.bf16.msra.mxu0 %v4072_v18  ;;  %v1405_v18 = vld [vmem:[#allocation19 + $0x590] sm:$0xff] }
 0x3b8   :  { %2947 = vmatpush2.bf16.msra.mxu1 %v4200_v21  ;;  %2907 = vmatprep.subr.bf16.mxu0 %v4065_v24  ;;  %v1409_v21 = vld [vmem:[#allocation19 + $0x5b0] sm:$0xff]  ;;  %v4146_v24 = vcombine.low %v1413_v4, %v1417_v5 }
 0x3b9   :  { %2948 = vmatprep.subr.bf16.mxu1 %v4193_v25  ;;  %v4011_v25 = vcombine.high %v1277_v13, %v1281_v14  ;;  %v4139_v16 = vcombine.high %v1405_v18, %v1409_v21  ;;  %v1229_v1 = vld [vmem:[#allocation19 + $0x10] sm:$0xff] }
 0x3ba   :  { %v1233_v4 = vld [vmem:[#allocation19 + $0x30] sm:$0xff] }
 0x3bb   :  { %2908 = vmatpush2.bf16.msra.mxu0 %v4064_v19  ;;  %v1401_v19 = vld [vmem:[#allocation19 + $0x570] sm:$0xff] }
 0x3bc   :  { %2949 = vmatpush2.bf16.msra.mxu1 %v4192_v22  ;;  %2909 = vmatprep.subr.bf16.mxu0 %v4057_v23  ;;  %v4010_v22 = vcombine.low %v1277_v13, %v1281_v14  ;;  %v4138_v23 = vcombine.low %v1405_v18, %v1409_v21  ;;  %v4131_v30 = vcombine.high %v1397_v17, %v1401_v19  ;;  %v1357_v5 = vld [vmem:[#allocation19 + $0x410] sm:$0xff] }
 0x3bd   :  { %2950 = vmatprep.subr.bf16.mxu1 %v4185_v28  ;;  %v4003_v28 = vcombine.high %v1269_v26, %v1273_v15  ;;  %v1349_v14 = vld [vmem:[#allocation19 + $0x3d0] sm:$0xff] }
 0x3be   :  { %v1477_v18 = vld [vmem:[#allocation19 + $0x7d0] sm:$0xff] }
 0x3bf   :  { %2910 = vmatpush2.bf16.msra.mxu0 %v4056_v34  ;;  %v1393_v34 = vld [vmem:[#allocation19 + $0x530] sm:$0xff] }
 0x3c0   :  { %2951 = vmatpush2.bf16.msra.mxu1 %v4184_v35  ;;  %2911 = vmatprep.subr.bf16.mxu0 %v4049_v36  ;;  %v4002_v35 = vcombine.low %v1269_v26, %v1273_v15  ;;  %v4130_v36 = vcombine.low %v1397_v17, %v1401_v19  ;;  %v4123_v41 = vcombine.high %v1389_v33, %v1393_v34  ;;  %v1481_v21 = vld [vmem:[#allocation19 + $0x7f0] sm:$0xff] }
 0x3c1   :  { %2952 = vmatprep.subr.bf16.mxu1 %v4177_v3  ;;  %v3995_v3 = vcombine.high %v1261_v31, %v1265_v32  ;;  %v4211_v15 = vcombine.high %v1477_v18, %v1481_v21  ;;  %v1345_v17 = vld [vmem:[#allocation19 + $0x3b0] sm:$0xff] }
 0x3c2   :  { %v1469_v19 = vld [vmem:[#allocation19 + $0x790] sm:$0xff] }
 0x3c3   :  { %2912 = vmatpush2.bf16.msra.mxu0 %v4048_v40  ;;  %v1385_v40 = vld [vmem:[#allocation19 + $0x4f0] sm:$0xff] }
 0x3c4   :  { %2953 = vmatpush2.bf16.msra.mxu1 %v4176_v61  ;;  %2913 = vmatprep.subr.bf16.mxu0 %v4041_v62  ;;  %v3994_v61 = vcombine.low %v1261_v31, %v1265_v32  ;;  %v4122_v62 = vcombine.low %v1389_v33, %v1393_v34  ;;  %v4115_v0 = vcombine.high %v1381_v39, %v1385_v40  ;;  %v1333_v32 = vld [vmem:[#allocation19 + $0x350] sm:$0xff] }
 0x3c5   :  { %2954 = vmatprep.subr.bf16.mxu1 %v4169_v63  ;;  %v3987_v63 = vcombine.high %v1253_v37, %v1257_v38  ;;  %v1337_v33 = vld [vmem:[#allocation19 + $0x370] sm:$0xff] }
 0x3c6   :  { %v1461_v34 = vld [vmem:[#allocation19 + $0x750] sm:$0xff] }
 0x3c7   :  { %2914 = vmatpush2.bf16.msra.mxu0 %v4040_v43  ;;  %v1377_v43 = vld [vmem:[#allocation19 + $0x4b0] sm:$0xff] }
 0x3c8   :  { %2955 = vmatpush2.bf16.msra.mxu1 %v4168_v44  ;;  %2915 = vmatprep.subr.bf16.mxu0 %v4033_v55  ;;  %v3986_v44 = vcombine.low %v1253_v37, %v1257_v38  ;;  %v4114_v55 = vcombine.low %v1381_v39, %v1385_v40  ;;  %v4107_v46 = vcombine.high %v1373_v42, %v1377_v43  ;;  %v1325_v38 = vld [vmem:[#allocation19 + $0x310] sm:$0xff] }
 0x3c9   :  { %2956 = vmatprep.subr.bf16.mxu1 %v4161_v45  ;;  %v3979_v45 = vcombine.high %v1245_v54, %v1249_v2  ;;  %v1329_v39 = vld [vmem:[#allocation19 + $0x330] sm:$0xff] }
 0x3ca   :  { %v1453_v40 = vld [vmem:[#allocation19 + $0x710] sm:$0xff] }
 0x3cb   :  { %2916 = vmatpush2.bf16.msra.mxu0 %v4032_v56  ;;  %v1369_v56 = vld [vmem:[#allocation19 + $0x470] sm:$0xff] }
 0x3cc   :  { %2957 = vmatpush2.bf16.msra.mxu1 %v4160_v57  ;;  %2917 = vmatprep.subr.bf16.mxu0 %v4025_v58  ;;  %v3978_v57 = vcombine.low %v1245_v54, %v1249_v2  ;;  %v4106_v58 = vcombine.low %v1373_v42, %v1377_v43  ;;  %v4099_v60 = vcombine.high %v1365_v50, %v1369_v56  ;;  %v1317_v2 = vld [vmem:[#allocation19 + $0x2d0] sm:$0xff] }
 0x3cd   :  { %2958 = vmatprep.subr.bf16.mxu1 %v4153_v59  ;;  %v3971_v59 = vcombine.high %v1237_v47, %v1241_v49  ;;  %v1321_v42 = vld [vmem:[#allocation19 + $0x2f0] sm:$0xff] }
 0x3ce   :  { %v1445_v43 = vld [vmem:[#allocation19 + $0x6d0] sm:$0xff] }
 0x3cf   :  { %2918 = vmatpush2.bf16.msra.mxu0 %v4024_v8  ;;  %v1361_v8 = vld [vmem:[#allocation19 + $0x430] sm:$0xff] }
 0x3d0   :  { %2959 = vmatpush2.bf16.msra.mxu1 %v4152_v10  ;;  %2969 = vmatprep.subr.bf16.mxu0 %v4019_v11  ;;  %v3970_v10 = vcombine.low %v1237_v47, %v1241_v49  ;;  %v4098_v11 = vcombine.low %v1365_v50, %v1369_v56  ;;  %v4091_v13 = vcombine.high %v1357_v5, %v1361_v8  ;;  %v1309_v49 = vld [vmem:[#allocation19 + $0x290] sm:$0xff] }
 0x3d1   :  { %3010 = vmatprep.subr.bf16.mxu1 %v4147_v12  ;;  %v3963_v12 = vcombine.high %v1229_v1, %v1233_v4  ;;  %v1313_v50 = vld [vmem:[#allocation19 + $0x2b0] sm:$0xff] }
 0x3d2   :  { %2920 = vmatmul.mubr.bf16.vlgmr.msra.gmra.mxu0 %v5171_v52  ;;  %v1437_v56 = vld [vmem:[#allocation19 + $0x690] sm:$0xff] }
 0x3d3   :  { %2961 = vmatmul.mubr.bf16.vlgmr.msra.gmra.mxu1 %v5174_v53  ;;  %2970 = vmatpush1.bf16.msra.mxu0 %v4018_v20  ;;  %v1353_v20 = vld [vmem:[#allocation19 + $0x3f0] sm:$0xff] }
 0x3d4   :  { %3001 = vmatprep.mubr.bf16.mxu0 %v5167_v48  ;;  %3011 = vmatpush1.bf16.msra.mxu1 %v4146_v24  ;;  %v3962_v24 = vcombine.low %v1229_v1, %v1233_v4  ;;  %v4083_v26 = vcombine.high %v1349_v14, %v1353_v20  ;;  %v1301_v4 = vld [vmem:[#allocation19 + $0x250] sm:$0xff] }
 0x3d5   :  { %3042 = vmatprep.mubr.bf16.mxu1 %v5169_v51  ;;  %2971 = vmatprep.subr.bf16.mxu0 %v4011_v25  ;;  %v4090_v25 = vcombine.low %v1357_v5, %v1361_v8  ;;  %v1305_v5 = vld [vmem:[#allocation19 + $0x270] sm:$0xff] }
 0x3d6   :  { %3012 = vmatprep.subr.bf16.mxu1 %v4139_v16  ;;  %v1341_v16 = vld [vmem:[#allocation19 + $0x390] sm:$0xff] }
 0x3d7   :  { %2972 = vmatpush1.bf16.msra.mxu0 %v4010_v22  ;;  %v1473_v22 = vld [vmem:[#allocation19 + $0x7b0] sm:$0xff] }
 0x3d8   :  { %3013 = vmatpush1.bf16.msra.mxu1 %v4138_v23  ;;  %2973 = vmatprep.subr.bf16.mxu0 %v4003_v28  ;;  %v4082_v23 = vcombine.low %v1349_v14, %v1353_v20  ;;  %v4210_v28 = vcombine.low %v1477_v18, %v1481_v21  ;;  %v4203_v31 = vcombine.high %v1469_v19, %v1473_v22  ;;  %v1429_v8 = vld [vmem:[#allocation19 + $0x650] sm:$0xff] }
 0x3d9   :  { %3014 = vmatprep.subr.bf16.mxu1 %v4131_v30  ;;  %v4075_v30 = vcombine.high %v1341_v16, %v1345_v17  ;;  %v1293_v20 = vld [vmem:[#allocation19 + $0x210] sm:$0xff] }
 0x3da   :  { %v1297_v18 = vld [vmem:[#allocation19 + $0x230] sm:$0xff] }
 0x3db   :  { %2974 = vmatpush1.bf16.msra.mxu0 %v4002_v35  ;;  %v1465_v35 = vld [vmem:[#allocation19 + $0x770] sm:$0xff] }
 0x3dc   :  { %3015 = vmatpush1.bf16.msra.mxu1 %v4130_v36  ;;  %2975 = vmatprep.subr.bf16.mxu0 %v3995_v3  ;;  %v4074_v36 = vcombine.low %v1341_v16, %v1345_v17  ;;  %v4202_v3 = vcombine.low %v1469_v19, %v1473_v22  ;;  %v4195_v37 = vcombine.high %v1461_v34, %v1465_v35  ;;  %v1421_v21 = vld [vmem:[#allocation19 + $0x610] sm:$0xff]  ;;  %v1286_v17 = vld [vmem:[#allocation19 + $0x1d8] sm:$0xff] }
 0x3dd   :  { %3016 = vmatprep.subr.bf16.mxu1 %v4123_v41  ;;  %v4067_v41 = vcombine.high %v1333_v32, %v1337_v33  ;;  %v1290_v19 = vld [vmem:[#allocation19 + $0x1f8] sm:$0xff] }
 0x3de   :  { %v1414_v22 = vld [vmem:[#allocation19 + $0x5d8] sm:$0xff] }
 0x3df   :  { %2976 = vmatpush1.bf16.msra.mxu0 %v3994_v61  ;;  %v1457_v61 = vld [vmem:[#allocation19 + $0x730] sm:$0xff] }
 0x3e0   :  { %3017 = vmatpush1.bf16.msra.mxu1 %v4122_v62  ;;  %2977 = vmatprep.subr.bf16.mxu0 %v3987_v63  ;;  %v4066_v62 = vcombine.low %v1333_v32, %v1337_v33  ;;  %v4194_v63 = vcombine.low %v1461_v34, %v1465_v35  ;;  %v4187_v54 = vcombine.high %v1453_v40, %v1457_v61  ;;  %v1278_v33 = vld [vmem:[#allocation19 + $0x198] sm:$0xff] }
 0x3e1   :  { %3018 = vmatprep.subr.bf16.mxu1 %v4115_v0  ;;  %v4059_v0 = vcombine.high %v1325_v38, %v1329_v39  ;;  %v1282_v34 = vld [vmem:[#allocation19 + $0x1b8] sm:$0xff]  ;;  %v4020_v35 = vcombine.low %v1286_v17, %v1290_v19 }
 0x3e3   :  { %2978 = vmatpush1.bf16.msra.mxu0 %v3986_v44  ;;  %v1449_v44 = vld [vmem:[#allocation19 + $0x6f0] sm:$0xff] }
 0x3e4   :  { %3019 = vmatpush1.bf16.msra.mxu1 %v4114_v55  ;;  %2979 = vmatprep.subr.bf16.mxu0 %v3979_v45  ;;  %v4058_v55 = vcombine.low %v1325_v38, %v1329_v39  ;;  %v4186_v45 = vcombine.low %v1453_v40, %v1457_v61  ;;  %v4179_v47 = vcombine.high %v1445_v43, %v1449_v44  ;;  %v1270_v38 = vld [vmem:[#allocation19 + $0x158] sm:$0xff] }
 0x3e5   :  { %3020 = vmatprep.subr.bf16.mxu1 %v4107_v46  ;;  %v4051_v46 = vcombine.high %v1317_v2, %v1321_v42  ;;  %v1274_v39 = vld [vmem:[#allocation19 + $0x178] sm:$0xff] }
 0x3e6   :  { %v1398_v61 = vld [vmem:[#allocation19 + $0x558] sm:$0xff] }
 0x3e7   :  { %2980 = vmatpush1.bf16.msra.mxu0 %v3978_v57  ;;  %v1441_v57 = vld [vmem:[#allocation19 + $0x6b0] sm:$0xff] }
 0x3e8   :  { %3021 = vmatpush1.bf16.msra.mxu1 %v4106_v58  ;;  %2981 = vmatprep.subr.bf16.mxu0 %v3971_v59  ;;  %v4050_v58 = vcombine.low %v1317_v2, %v1321_v42  ;;  %v4178_v59 = vcombine.low %v1445_v43, %v1449_v44  ;;  %v4171_v1 = vcombine.high %v1437_v56, %v1441_v57  ;;  %v1262_v42 = vld [vmem:[#allocation19 + $0x118] sm:$0xff] }
 0x3e9   :  { %3022 = vmatprep.subr.bf16.mxu1 %v4099_v60  ;;  %v4043_v60 = vcombine.high %v1309_v49, %v1313_v50  ;;  %v1266_v43 = vld [vmem:[#allocation19 + $0x138] sm:$0xff] }
 0x3ea   :  { %v1390_v44 = vld [vmem:[#allocation19 + $0x518] sm:$0xff] }
 0x3eb   :  { %2982 = vmatpush1.bf16.msra.mxu0 %v3970_v10  ;;  %v1433_v10 = vld [vmem:[#allocation19 + $0x670] sm:$0xff] }
 0x3ec   :  { %3023 = vmatpush1.bf16.msra.mxu1 %v4098_v11  ;;  %2983 = vmatprep.subr.bf16.mxu0 %v3963_v12  ;;  %v4042_v11 = vcombine.low %v1309_v49, %v1313_v50  ;;  %v4170_v12 = vcombine.low %v1437_v56, %v1441_v57  ;;  %v4163_v14 = vcombine.high %v1429_v8, %v1433_v10  ;;  %v1254_v49 = vld [vmem:[#allocation19 + $0xd8] sm:$0xff] }
 0x3ed   :  { %3024 = vmatprep.subr.bf16.mxu1 %v4091_v13  ;;  %v4035_v13 = vcombine.high %v1301_v4, %v1305_v5  ;;  %v1258_v50 = vld [vmem:[#allocation19 + $0xf8] sm:$0xff] }
 0x3ee   :  { %v1382_v56 = vld [vmem:[#allocation19 + $0x4d8] sm:$0xff] }
 0x3ef   :  { %2984 = vmatpush1.bf16.msra.mxu0 %v3962_v24  ;;  %v1425_v24 = vld [vmem:[#allocation19 + $0x630] sm:$0xff]  ;;  %v1386_v57 = vld [vmem:[#allocation19 + $0x4f8] sm:$0xff] }
 0x3f0   :  { %3025 = vmatpush1.bf16.msra.mxu1 %v4090_v25  ;;  %2985 = vmatprep.subr.bf16.mxu0 %v4083_v26  ;;  %v4034_v25 = vcombine.low %v1301_v4, %v1305_v5  ;;  %v4162_v26 = vcombine.low %v1429_v8, %v1433_v10  ;;  %v4155_v16 = vcombine.high %v1421_v21, %v1425_v24  ;;  %v1250_v4 = vld [vmem:[#allocation19 + $0xb8] sm:$0xff] }
 0x3f1   :  { %3026 = vmatprep.subr.bf16.mxu1 %v4211_v15  ;;  %v4027_v15 = vcombine.high %v1293_v20, %v1297_v18  ;;  %v1374_v5 = vld [vmem:[#allocation19 + $0x498] sm:$0xff]  ;;  %v3988_v10 = vcombine.low %v1254_v49, %v1258_v50 }
 0x3f2   :  { %v1378_v8 = vld [vmem:[#allocation19 + $0x4b8] sm:$0xff] }
 0x3f3   :  { %2986 = vmatpush2.bf16.msra.mxu0 %v4082_v23  ;;  %v1418_v23 = vld [vmem:[#allocation19 + $0x5f8] sm:$0xff] }
 0x3f4   :  { %3027 = vmatpush2.bf16.msra.mxu1 %v4210_v28  ;;  %2987 = vmatprep.subr.bf16.mxu0 %v4075_v30  ;;  %v4026_v28 = vcombine.low %v1293_v20, %v1297_v18  ;;  %v4154_v30 = vcombine.low %v1421_v21, %v1425_v24  ;;  %v4149_v32 = vcombine.high %v1414_v22, %v1418_v23  ;;  %v1242_v20 = vld [vmem:[#allocation19 + $0x78] sm:$0xff] }
 0x3f5   :  { %3028 = vmatprep.subr.bf16.mxu1 %v4203_v31  ;;  %v4021_v31 = vcombine.high %v1286_v17, %v1290_v19  ;;  %v1366_v18 = vld [vmem:[#allocation19 + $0x458] sm:$0xff] }
 0x3f6   :  { %v1370_v21 = vld [vmem:[#allocation19 + $0x478] sm:$0xff] }
 0x3f7   :  { %2988 = vmatpush2.bf16.msra.mxu0 %v4074_v36  ;;  %v1406_v36 = vld [vmem:[#allocation19 + $0x598] sm:$0xff] }
 0x3f8   :  { %3029 = vmatpush2.bf16.msra.mxu1 %v4202_v3  ;;  %2989 = vmatprep.subr.bf16.mxu0 %v4067_v41  ;;  %v1410_v3 = vld [vmem:[#allocation19 + $0x5b8] sm:$0xff]  ;;  %v4148_v41 = vcombine.low %v1414_v22, %v1418_v23 }
 0x3f9   :  { %3030 = vmatprep.subr.bf16.mxu1 %v4195_v37  ;;  %v4013_v37 = vcombine.high %v1278_v33, %v1282_v34  ;;  %v4141_v40 = vcombine.high %v1406_v36, %v1410_v3  ;;  %v1234_v17 = vld [vmem:[#allocation19 + $0x38] sm:$0xff] }
 0x3fa   :  { %v1358_v19 = vld [vmem:[#allocation19 + $0x418] sm:$0xff] }
 0x3fb   :  { %2990 = vmatpush2.bf16.msra.mxu0 %v4066_v62  ;;  %v1402_v62 = vld [vmem:[#allocation19 + $0x578] sm:$0xff] }
 0x3fc   :  { %3031 = vmatpush2.bf16.msra.mxu1 %v4194_v63  ;;  %2991 = vmatprep.subr.bf16.mxu0 %v4059_v0  ;;  %v4012_v63 = vcombine.low %v1278_v33, %v1282_v34  ;;  %v4140_v0 = vcombine.low %v1406_v36, %v1410_v3  ;;  %v4133_v2 = vcombine.high %v1398_v61, %v1402_v62  ;;  %v1362_v22 = vld [vmem:[#allocation19 + $0x438] sm:$0xff] }
 0x3fd   :  { %3032 = vmatprep.subr.bf16.mxu1 %v4187_v54  ;;  %v4005_v54 = vcombine.high %v1270_v38, %v1274_v39  ;;  %v1354_v33 = vld [vmem:[#allocation19 + $0x3f8] sm:$0xff]  ;;  %v4092_v3 = vcombine.low %v1358_v19, %v1362_v22 }
 0x3fe   :  { %v1478_v34 = vld [vmem:[#allocation19 + $0x7d8] sm:$0xff] }
 0x3ff   :  { %2992 = vmatpush2.bf16.msra.mxu0 %v4058_v55  ;;  %v1394_v55 = vld [vmem:[#allocation19 + $0x538] sm:$0xff] }
 0x400   :  { %3033 = vmatpush2.bf16.msra.mxu1 %v4186_v45  ;;  %2993 = vmatprep.subr.bf16.mxu0 %v4051_v46  ;;  %v4004_v45 = vcombine.low %v1270_v38, %v1274_v39  ;;  %v4132_v46 = vcombine.low %v1398_v61, %v1402_v62  ;;  %v1342_v38 = vld [vmem:[#allocation19 + $0x398] sm:$0xff] }
 0x401   :  { %3034 = vmatprep.subr.bf16.mxu1 %v4179_v47  ;;  %v3997_v47 = vcombine.high %v1262_v42, %v1266_v43  ;;  %v1346_v39 = vld [vmem:[#allocation19 + $0x3b8] sm:$0xff] }
 0x402   :  { %v1474_v61 = vld [vmem:[#allocation19 + $0x7b8] sm:$0xff] }
 0x403   :  { %2994 = vmatpush2.bf16.msra.mxu0 %v4050_v58  ;;  %v4124_v58 = vcombine.low %v1390_v44, %v1394_v55 }
 0x404   :  { %3035 = vmatpush2.bf16.msra.mxu1 %v4178_v59  ;;  %2995 = vmatprep.subr.bf16.mxu0 %v4043_v60  ;;  %v3989_v59 = vcombine.high %v1254_v49, %v1258_v50  ;;  %v4117_v60 = vcombine.high %v1382_v56, %v1386_v57  ;;  %v1330_v49 = vld [vmem:[#allocation19 + $0x338] sm:$0xff] }
 0x405   :  { %3036 = vmatprep.subr.bf16.mxu1 %v4171_v1  ;;  %v1246_v1 = vld [vmem:[#allocation19 + $0x98] sm:$0xff] }
 0x406   :  { %v3980_v24 = vcombine.low %v1246_v1, %v1250_v4  ;;  %v1454_v50 = vld [vmem:[#allocation19 + $0x718] sm:$0xff] }
 0x407   :  { %2996 = vmatpush2.bf16.msra.mxu0 %v4042_v11  ;;  %v4116_v11 = vcombine.low %v1382_v56, %v1386_v57  ;;  %v1458_v56 = vld [vmem:[#allocation19 + $0x738] sm:$0xff] }
 0x408   :  { %3037 = vmatpush2.bf16.msra.mxu1 %v4170_v12  ;;  %2997 = vmatprep.subr.bf16.mxu0 %v4035_v13  ;;  %v3981_v12 = vcombine.high %v1246_v1, %v1250_v4  ;;  %v4109_v13 = vcombine.high %v1374_v5, %v1378_v8  ;;  %v1322_v1 = vld [vmem:[#allocation19 + $0x2f8] sm:$0xff] }
 0x409   :  { %3038 = vmatprep.subr.bf16.mxu1 %v4163_v14  ;;  %v1238_v14 = vld [vmem:[#allocation19 + $0x58] sm:$0xff] }
 0x40a   :  { %v3972_v23 = vcombine.low %v1238_v14, %v1242_v20  ;;  %v1446_v4 = vld [vmem:[#allocation19 + $0x6d8] sm:$0xff] }
 0x40b   :  { %2998 = vmatpush2.bf16.msra.mxu0 %v4034_v25  ;;  %v4108_v25 = vcombine.low %v1374_v5, %v1378_v8  ;;  %v1450_v5 = vld [vmem:[#allocation19 + $0x6f8] sm:$0xff] }
 0x40c   :  { %3039 = vmatpush2.bf16.msra.mxu1 %v4162_v26  ;;  %2999 = vmatprep.subr.bf16.mxu0 %v4027_v15  ;;  %v3973_v26 = vcombine.high %v1238_v14, %v1242_v20  ;;  %v4101_v15 = vcombine.high %v1366_v18, %v1370_v21  ;;  %v1314_v14 = vld [vmem:[#allocation19 + $0x2b8] sm:$0xff] }
 0x40d   :  { %3040 = vmatprep.subr.bf16.mxu1 %v4155_v16  ;;  %v1230_v16 = vld [vmem:[#allocation19 + $0x18] sm:$0xff] }
 0x40e   :  { %v3964_v36 = vcombine.low %v1230_v16, %v1234_v17  ;;  %v1438_v20 = vld [vmem:[#allocation19 + $0x698] sm:$0xff] }
 0x40f   :  { %3000 = vmatpush2.bf16.msra.mxu0 %v4026_v28  ;;  %v4100_v28 = vcombine.low %v1366_v18, %v1370_v21  ;;  %v1442_v18 = vld [vmem:[#allocation19 + $0x6b8] sm:$0xff] }
 0x410   :  { %3041 = vmatpush2.bf16.msra.mxu1 %v4154_v30  ;;  %3051 = vmatprep.subr.bf16.mxu0 %v4021_v31  ;;  %v3965_v30 = vcombine.high %v1230_v16, %v1234_v17  ;;  %v4093_v31 = vcombine.high %v1358_v19, %v1362_v22  ;;  %v1306_v16 = vld [vmem:[#allocation19 + $0x278] sm:$0xff] }
 0x411   :  { %3092 = vmatprep.subr.bf16.mxu1 %v4149_v32  ;;  %v1350_v32 = vld [vmem:[#allocation19 + $0x3d8] sm:$0xff] }
 0x412   :  { %3002 = vmatmul.mubr.bf16.vlgmr.msra.gmra.mxu0 %v5171_v52  ;;  %v4084_v62 = vcombine.low %v1350_v32, %v1354_v33  ;;  %v1430_v17 = vld [vmem:[#allocation19 + $0x658] sm:$0xff] }
 0x413   :  { %3043 = vmatmul.mubr.bf16.vlgmr.msra.gmra.mxu1 %v5174_v53  ;;  %3052 = vmatpush1.bf16.msra.mxu0 %v4020_v35  ;;  %v1482_v35 = vld [vmem:[#allocation19 + $0x7f8] sm:$0xff] }
 0x414   :  { %3083 = vmatprep.mubr.bf16.mxu0 %v5167_v48  ;;  %3093 = vmatpush1.bf16.msra.mxu1 %v4148_v41  ;;  %v4125_v48 = vcombine.high %v1390_v44, %v1394_v55  ;;  %v4085_v41 = vcombine.high %v1350_v32, %v1354_v33  ;;  %v1466_v44 = vld [vmem:[#allocation19 + $0x778] sm:$0xff]  ;;  %v4076_v55 = vcombine.low %v1342_v38, %v1346_v39 }
 0x415   :  { %3124 = vmatprep.mubr.bf16.mxu1 %v5169_v51  ;;  %3053 = vmatprep.subr.bf16.mxu0 %v4013_v37  ;;  %v3996_v51 = vcombine.low %v1262_v42, %v1266_v43  ;;  %v4213_v37 = vcombine.high %v1478_v34, %v1482_v35  ;;  %v1338_v42 = vld [vmem:[#allocation19 + $0x378] sm:$0xff] }
 0x416   :  { %3094 = vmatprep.subr.bf16.mxu1 %v4141_v40  ;;  %v1470_v40 = vld [vmem:[#allocation19 + $0x798] sm:$0xff] }
 0x417   :  { %3054 = vmatpush1.bf16.msra.mxu0 %v4012_v63  ;;  %v4212_v63 = vcombine.low %v1478_v34, %v1482_v35  ;;  %v1462_v43 = vld [vmem:[#allocation19 + $0x758] sm:$0xff] }
 0x418   :  { %3095 = vmatpush1.bf16.msra.mxu1 %v4140_v0  ;;  %3055 = vmatprep.subr.bf16.mxu0 %v4005_v54  ;;  %v4077_v0 = vcombine.high %v1342_v38, %v1346_v39  ;;  %v4205_v54 = vcombine.high %v1470_v40, %v1474_v61  ;;  %v1434_v19 = vld [vmem:[#allocation19 + $0x678] sm:$0xff] }
 0x419   :  { %3096 = vmatprep.subr.bf16.mxu1 %v4133_v2  ;;  %v1334_v2 = vld [vmem:[#allocation19 + $0x358] sm:$0xff] }
 0x41a   :  { %v4068_v57 = vcombine.low %v1334_v2, %v1338_v42  ;;  %v1298_v32 = vld [vmem:[#allocation19 + $0x238] sm:$0xff] }
 0x41b   :  { %3056 = vmatpush1.bf16.msra.mxu0 %v4004_v45  ;;  %v4204_v45 = vcombine.low %v1470_v40, %v1474_v61  ;;  %v1422_v33 = vld [vmem:[#allocation19 + $0x618] sm:$0xff] }
 0x41c   :  { %3097 = vmatpush1.bf16.msra.mxu1 %v4132_v46  ;;  %3057 = vmatprep.subr.bf16.mxu0 %v3997_v47  ;;  %v4069_v46 = vcombine.high %v1334_v2, %v1338_v42  ;;  %v4197_v47 = vcombine.high %v1462_v43, %v1466_v44  ;;  %v1426_v34 = vld [vmem:[#allocation19 + $0x638] sm:$0xff]  ;;  %v4566_v2 = vld [vmem:[#allocation20 + $0xf0] sm:$0xff]  }
 0x41d   :  { %3098 = vmatprep.subr.bf16.mxu1 %v4125_v48  ;;  %v1326_v48 = vld [vmem:[#allocation19 + $0x318] sm:$0xff]  ;;  %v4156_v38 = vcombine.low %v1422_v33, %v1426_v34 }
 0x41e   :  { %v4060_v8 = vcombine.low %v1326_v48, %v1330_v49  ;;  %v4548_v39 = vld [vmem:[#allocation20 + $0x78] sm:$0xff]  }
 0x41f   :  { %3058 = vmatpush1.bf16.msra.mxu0 %v3996_v51  ;;  %v4196_v51 = vcombine.low %v1462_v43, %v1466_v44  ;;  %v4564_v40 = vld [vmem:[#allocation20 + $0xf8] sm:$0xff]   ;;  %v4551_v44 = vld [vmem:[#allocation20 + $0x30] sm:$0xff]  }
 0x420   :  { %3099 = vmatpush1.bf16.msra.mxu1 %v4124_v58  ;;  %3059 = vmatprep.subr.bf16.mxu0 %v3989_v59  ;;  %v4061_v58 = vcombine.high %v1326_v48, %v1330_v49  ;;  %v4189_v59 = vcombine.high %v1454_v50, %v1458_v56  ;;  %v4549_v61 = vld [vmem:[#allocation20 + $0x38] sm:$0xff]   ;;  %v4568_v49 = vld [vmem:[#allocation20 + $0xe8] sm:$0xff]  }
 0x421   :  { %3100 = vmatprep.subr.bf16.mxu1 %v4117_v60  ;;  %v1318_v60 = vld [vmem:[#allocation19 + $0x2d8] sm:$0xff] }
 0x422   :  { %v4052_v21 = vcombine.low %v1318_v60, %v1322_v1 }
 0x423   :  { %3060 = vmatpush1.bf16.msra.mxu0 %v3988_v10  ;;  %v4188_v10 = vcombine.low %v1454_v50, %v1458_v56 }
 0x424   :  { %3101 = vmatpush1.bf16.msra.mxu1 %v4116_v11  ;;  %3061 = vmatprep.subr.bf16.mxu0 %v3981_v12  ;;  %v4053_v11 = vcombine.high %v1318_v60, %v1322_v1  ;;  %v4181_v12 = vcombine.high %v1446_v4, %v1450_v5  ;;  %v4570_v60 = vld [vmem:[#allocation20 + $0xe0] sm:$0xff]  }
 0x425   :  { %3102 = vmatprep.subr.bf16.mxu1 %v4109_v13  ;;  %v1310_v13 = vld [vmem:[#allocation19 + $0x298] sm:$0xff]  ;;  %v4555_v1 = vld [vmem:[#allocation20 + $0x20] sm:$0xff]  }
 0x426   :  { %v4044_v22 = vcombine.low %v1310_v13, %v1314_v14 }
 0x427   :  { %3062 = vmatpush1.bf16.msra.mxu0 %v3980_v24  ;;  %v4180_v24 = vcombine.low %v1446_v4, %v1450_v5 }
 0x428   :  { %3103 = vmatpush1.bf16.msra.mxu1 %v4108_v25  ;;  %3063 = vmatprep.subr.bf16.mxu0 %v3973_v26  ;;  %v4045_v25 = vcombine.high %v1310_v13, %v1314_v14  ;;  %v4173_v26 = vcombine.high %v1438_v20, %v1442_v18  ;;  %v4557_v13 = vld [vmem:[#allocation20 + $0x18] sm:$0xff]   ;;  %v4558_v14 = vld [vmem:[#allocation20 + $0x50] sm:$0xff]  }
 0x429   :  { %3104 = vmatprep.subr.bf16.mxu1 %v4101_v15  ;;  %v1302_v15 = vld [vmem:[#allocation19 + $0x258] sm:$0xff] }
 0x42a   :  { %v4036_v35 = vcombine.low %v1302_v15, %v1306_v16 }
 0x42b   :  { %3064 = vmatpush1.bf16.msra.mxu0 %v3972_v23  ;;  %v4172_v23 = vcombine.low %v1438_v20, %v1442_v18  ;;  %v4573_v20 = vld [vmem:[#allocation20 + $0x98] sm:$0xff]  }
 0x42c   :  { %3105 = vmatpush1.bf16.msra.mxu1 %v4100_v28  ;;  %3065 = vmatprep.subr.bf16.mxu0 %v3965_v30  ;;  %v4037_v28 = vcombine.high %v1302_v15, %v1306_v16  ;;  %v4165_v30 = vcombine.high %v1430_v17, %v1434_v19  ;;  %v4561_v16 = vld [vmem:[#allocation20 + $0x8] sm:$0xff]  }
 0x42d   :  { %3106 = vmatprep.subr.bf16.mxu1 %v4093_v31  ;;  %v1294_v31 = vld [vmem:[#allocation19 + $0x218] sm:$0xff] }
 0x42f   :  { %3066 = vmatpush1.bf16.msra.mxu0 %v3964_v36  ;;  %v4164_v36 = vcombine.low %v1430_v17, %v1434_v19  ;;  %v4562_v17 = vld [vmem:[#allocation20 + $0x40] sm:$0xff]   ;;  %v4577_v19 = vld [vmem:[#allocation20 + $0x88] sm:$0xff]  }
 0x430   :  { %3107 = vmatpush1.bf16.msra.mxu1 %v4092_v3  ;;  %3067 = vmatprep.subr.bf16.mxu0 %v4085_v41  ;;  %v4029_v3 = vcombine.high %v1294_v31, %v1298_v32  ;;  %v4157_v41 = vcombine.high %v1422_v33, %v1426_v34  ;;  %v4596_v33 = vld [vmem:[#allocation20 + $0x1f8] sm:$0xff]  }
 0x431   :  { %3108 = vmatprep.subr.bf16.mxu1 %v4213_v37  ;;  %v4028_v37 = vcombine.low %v1294_v31, %v1298_v32  ;;  %v4580_v31 = vld [vmem:[#allocation20 + $0x178] sm:$0xff]  }
 0x432   :  { %v4581_v34 = vld [vmem:[#allocation20 + $0x138] sm:$0xff]  }
 0x433   :  { %3068 = vmatpush2.bf16.msra.mxu0 %v4084_v62  ;;  %v5198_v62 = vld [vmem:[%s5238_s14] sm:$0xff] }
 0x434   :  { %3109 = vmatpush2.bf16.msra.mxu1 %v4212_v63  ;;  %3069 = vmatprep.subr.bf16.mxu0 %v4077_v0  ;;  %v4550_v63 = vld [vmem:[#allocation20 + $0x70] sm:$0xff]   ;;  %v4565_v0 = vld [vmem:[#allocation20 + $0xb8] sm:$0xff]  }
 0x435   :  { %3110 = vmatprep.subr.bf16.mxu1 %v4205_v54  ;;  %v1492_v54 = vrot.slane %v5198_v62, %v5082_v9 }
 0x437   :  { %3070 = vmatpush2.bf16.msra.mxu0 %v4076_v55 }
 0x438   :  { %3111 = vmatpush2.bf16.msra.mxu1 %v4204_v45  ;;  %3071 = vmatprep.subr.bf16.mxu0 %v4069_v46  ;;  %v4552_v45 = vld [vmem:[#allocation20 + $0x68] sm:$0xff]   ;;  %v4567_v46 = vld [vmem:[#allocation20 + $0xb0] sm:$0xff]  }
 0x439   :  { %3112 = vmatprep.subr.bf16.mxu1 %v4197_v47 }
 0x43b   :  { %3072 = vmatpush2.bf16.msra.mxu0 %v4068_v57 }
 0x43c   :  { %3113 = vmatpush2.bf16.msra.mxu1 %v4196_v51  ;;  %3073 = vmatprep.subr.bf16.mxu0 %v4061_v58  ;;  %v4569_v51 = vld [vmem:[#allocation20 + $0xa8] sm:$0xff]  }
 0x43d   :  { %3114 = vmatprep.subr.bf16.mxu1 %v4189_v59 }
 0x43f   :  { %3074 = vmatpush2.bf16.msra.mxu0 %v4060_v8  ;;  %v4556_v8 = vld [vmem:[#allocation20 + $0x58] sm:$0xff]  }
 0x440   :  { %3115 = vmatpush2.bf16.msra.mxu1 %v4188_v10  ;;  %3075 = vmatprep.subr.bf16.mxu0 %v4053_v11  ;;  %v4571_v10 = vld [vmem:[#allocation20 + $0xa0] sm:$0xff]   ;;  %v1488_v11 = vrot.slane %v5198_v62, %v5079_v7  ;;  %v4576_v7 = vld [vmem:[#allocation20 + $0xc8] sm:$0xff]  }
 0x441   :  { %3116 = vmatprep.subr.bf16.mxu1 %v4181_v12  ;;  %v4572_v12 = vld [vmem:[#allocation20 + $0xd8] sm:$0xff]  }
 0x443   :  { %3076 = vmatpush2.bf16.msra.mxu0 %v4052_v21  ;;  %v4574_v21 = vld [vmem:[#allocation20 + $0xd0] sm:$0xff]  }
 0x444   :  { %3117 = vmatpush2.bf16.msra.mxu1 %v4180_v24  ;;  %3077 = vmatprep.subr.bf16.mxu0 %v4045_v25  ;;  %v4559_v24 = vld [vmem:[#allocation20 + $0x10] sm:$0xff]   ;;  %v4560_v25 = vld [vmem:[#allocation20 + $0x48] sm:$0xff]  }
 0x445   :  { %3118 = vmatprep.subr.bf16.mxu1 %v4173_v26  ;;  %v4575_v26 = vld [vmem:[#allocation20 + $0x90] sm:$0xff]  }
 0x447   :  { %3078 = vmatpush2.bf16.msra.mxu0 %v4044_v22 }
 0x448   :  { %3119 = vmatpush2.bf16.msra.mxu1 %v4172_v23  ;;  %3079 = vmatprep.subr.bf16.mxu0 %v4037_v28  ;;  %v4578_v23 = vld [vmem:[#allocation20 + $0xc0] sm:$0xff]  }
 0x449   :  { %3120 = vmatprep.subr.bf16.mxu1 %v4165_v30  ;;  %v4563_v28 = vld [vmem:[#allocation20] sm:$0xff]  }
 0x44a   :  { %v4579_v30 = vld [vmem:[#allocation20 + $0x80] sm:$0xff]  }
 0x44b   :  { %3080 = vmatpush2.bf16.msra.mxu0 %v4036_v35 }
 0x44c   :  { %3121 = vmatpush2.bf16.msra.mxu1 %v4164_v36  ;;  %3081 = vmatprep.subr.bf16.mxu0 %v4029_v3  ;;  %v4582_v36 = vld [vmem:[#allocation20 + $0x170] sm:$0xff]  }
 0x44d   :  { %3122 = vmatprep.subr.bf16.mxu1 %v4157_v41  ;;  %v4583_v3 = vld [vmem:[#allocation20 + $0x130] sm:$0xff]   ;;  %v4584_v41 = vld [vmem:[#allocation20 + $0x168] sm:$0xff]  }
 0x44f   :  { %3082 = vmatpush2.bf16.msra.mxu0 %v4028_v37  ;;  %v4585_v37 = vld [vmem:[#allocation20 + $0x128] sm:$0xff]  }
 0x450   :  { %3123 = vmatpush2.bf16.msra.mxu1 %v4156_v38  ;;  %4288 = vmatprep.subr.bf16.mxu0 %v4548_v39  ;;  %v4586_v38 = vld [vmem:[#allocation20 + $0x160] sm:$0xff]  }
 0x451   :  { %4310 = vmatprep.subr.bf16.mxu1 %v4564_v40  ;;  %v4587_v39 = vld [vmem:[#allocation20 + $0x120] sm:$0xff]   ;;  %v4588_v40 = vld [vmem:[#allocation20 + $0x158] sm:$0xff]  }
 0x452   :  { %3084 = vmatmul.mubr.bf16.vlgmr.msra.gmra.mxu0 %v5171_v52  ;;  %v2839_v42 = vpop.f32.mrf.mxu0  ;;  %v4553_v52 = vld [vmem:[#allocation20 + $0x28] sm:$0xff]  }
 0x453   :  { %3125 = vmatmul.mubr.bf16.vlgmr.msra.gmra.mxu1 %v5174_v53  ;;  %v2880_v43 = vpop.f32.mrf.mxu1  ;;  %4289 = vmatpush3.bf16.msra.mxu0 %v4549_v61  ;;  %v4554_v53 = vld [vmem:[#allocation20 + $0x60] sm:$0xff]   ;;  %v2840_v18 = vadd.f32 %v2839_v42, %v1488_v11  ;;  %v4589_v61 = vld [vmem:[#allocation20 + $0x118] sm:$0xff]   ;;  %v4601_v11 = vld [vmem:[#allocation20 + $0x1a8] sm:$0xff]  }
 0x454   :  { %v2841_v55 = vpop.f32.mrf.mxu0  ;;  %4290 = vmatprep.subr.bf16.mxu0 %v4550_v63  ;;  %4311 = vmatpush3.bf16.msra.mxu1 %v4565_v0  ;;  %v4590_v63 = vld [vmem:[#allocation20 + $0x150] sm:$0xff]   ;;  %v4594_v42 = vld [vmem:[#allocation20 + $0x140] sm:$0xff]  }
 0x455   :  { %v2842_v47 = vadd.f32 %v2841_v55, %v1492_v54  ;;  %v2882_v48 = vpop.f32.mrf.mxu1  ;;  %4312 = vmatprep.subr.bf16.mxu1 %v4566_v2  ;;  %v2881_v15 = vadd.f32 %v2880_v43, %v2840_v18  ;;  %v4591_v0 = vld [vmem:[#allocation20 + $0x110] sm:$0xff]   ;;  %v4592_v54 = vld [vmem:[#allocation20 + $0x148] sm:$0xff]   ;;  %v4595_v43 = vld [vmem:[#allocation20 + $0x100] sm:$0xff]   ;;  %v1500_v55 = vrot.slane %v5198_v62, %v5119_v29 }
 0x456   :  { %v2843_v9 = vpop.f32.mrf.mxu0  ;;  %v4593_v2 = vld [vmem:[#allocation20 + $0x108] sm:$0xff]   ;;  %v4597_v29 = vld [vmem:[#allocation20 + $0x1b8] sm:$0xff]   ;;  %v4606_v18 = vld [vmem:[#allocation20 + $0x1d0] sm:$0xff]  }
 0x457   :  { %v2883_v50 = vadd.f32 %v2882_v48, %v2842_v47  ;;  %v2884_v56 = vpop.f32.mrf.mxu1  ;;  %4291 = vmatpush3.bf16.msra.mxu0 %v4551_v44  ;;  %v3141_v22 = vmul.f32 0.01, %v2881_v15  ;;  %vm3133_vm9 = vcmp.ge.f32.partialorder %v2881_v15, 0.0  ;;  %v1496_v44 = vrot.slane %v5198_v62, %v5113_v27 }
 0x458   :  { %v2844_v57 = vpop.f32.mrf.mxu0  ;;  %4292 = vmatprep.subr.bf16.mxu0 %v4552_v45  ;;  %4313 = vmatpush3.bf16.msra.mxu1 %v4567_v46 }
 0x459   :  { %vm3134_vm8 = vcmp.ge.f32.partialorder %v2883_v50, 0.0  ;;  %v3142_v58 = vmul.f32 0.01, %v2883_v50  ;;  %v2885_v59 = vpop.f32.mrf.mxu1  ;;  %4314 = vmatprep.subr.bf16.mxu1 %v4568_v49  ;;  %v3149_v32 = vsel %vm3133_vm9, %v2881_v15, %v3141_v22  ;;  %v4611_v15 = vld [vmem:[#allocation20 + $0x180] sm:$0xff]  }
 0x45a   :  { %v3157_v35 = vpack.c.bf16 %v3149_v32, %v3149_v32 }
 0x45b   :  { %4293 = vmatpush3.bf16.msra.mxu0 %v4553_v52  ;;  %v3150_v4 = vsel %vm3134_vm8, %v2883_v50, %v3142_v58 }
 0x45c   :  { %4294 = vmatprep.subr.bf16.mxu0 %v4554_v53  ;;  %v3158_v5 = vpack.c.bf16 %v3150_v4, %v3150_v4  ;;  %4315 = vmatpush3.bf16.msra.mxu1 %v4569_v51 }
 0x45d   :  { %4316 = vmatprep.subr.bf16.mxu1 %v4570_v60 }
 0x45e   :  { %3716 = vmatprep.mubr.bf16.mxu0 %v3158_v5  ;;  %v4598_v5 = vld [vmem:[#allocation20 + $0x1f0] sm:$0xff]  }
 0x45f   :  { %4295 = vmatpush3.bf16.msra.mxu0 %v4555_v1 }
 0x460   :  { %4296 = vmatprep.subr.bf16.mxu0 %v4556_v8  ;;  %4317 = vmatpush3.bf16.msra.mxu1 %v4571_v10  ;;  %v4599_v8 = vld [vmem:[#allocation20 + $0x1b0] sm:$0xff]   ;;  %v4600_v10 = vld [vmem:[#allocation20 + $0x1e8] sm:$0xff]  }
 0x461   :  { %4318 = vmatprep.subr.bf16.mxu1 %v4572_v12  ;;  %v4602_v12 = vld [vmem:[#allocation20 + $0x1e0] sm:$0xff]  }
 0x463   :  { %4297 = vmatpush3.bf16.msra.mxu0 %v4557_v13  ;;  %v4603_v13 = vld [vmem:[#allocation20 + $0x1a0] sm:$0xff]  }
 0x464   :  { %4298 = vmatprep.subr.bf16.mxu0 %v4558_v14  ;;  %4319 = vmatpush3.bf16.msra.mxu1 %v4573_v20  ;;  %v4604_v14 = vld [vmem:[#allocation20 + $0x1d8] sm:$0xff]  }
 0x465   :  { %4320 = vmatprep.subr.bf16.mxu1 %v4574_v21  ;;  %v4605_v20 = vld [vmem:[#allocation20 + $0x198] sm:$0xff]   ;;  %v4607_v21 = vld [vmem:[#allocation20 + $0x190] sm:$0xff]  }
 0x467   :  { %4299 = vmatpush3.bf16.msra.mxu0 %v4559_v24  ;;  %v4608_v24 = vld [vmem:[#allocation20 + $0x1c8] sm:$0xff]  }
 0x468   :  { %4300 = vmatprep.subr.bf16.mxu0 %v4560_v25  ;;  %4321 = vmatpush3.bf16.msra.mxu1 %v4575_v26  ;;  %v4609_v25 = vld [vmem:[#allocation20 + $0x188] sm:$0xff]   ;;  %v4610_v26 = vld [vmem:[#allocation20 + $0x1c0] sm:$0xff]  }
 0x469   :  { %4322 = vmatprep.subr.bf16.mxu1 %v4576_v7  ;;  %v1503_v7 = vsub.s32 4, %v5076_v6 }
 0x46b   :  { %4301 = vmatpush3.bf16.msra.mxu0 %v4561_v16  ;;  %v1507_v16 = vsub.s32 5, %v5076_v6 }
 0x46c   :  { %4302 = vmatprep.subr.bf16.mxu0 %v4562_v17  ;;  %4323 = vmatpush3.bf16.msra.mxu1 %v4577_v19  ;;  %v1504_v17 = vrot.slane %v5198_v62, %v1503_v7 }
 0x46d   :  { %4324 = vmatprep.subr.bf16.mxu1 %v4578_v23  ;;  %v1508_v19 = vrot.slane %v5198_v62, %v1507_v16 }
 0x46f   :  { %4303 = vmatpush3.bf16.msra.mxu0 %v4563_v28 }
 0x470   :  { %4325 = vmatpush3.bf16.msra.mxu1 %v4579_v30  ;;  %4332 = vmatprep.subr.bf16.mxu0 %v4580_v31 }
 0x471   :  { %4354 = vmatprep.subr.bf16.mxu1 %v4596_v33 }
 0x472   :  { %3717 = vmatmul.mubr.bf16.vlgmr.msra.gmra.mxu0 %v3157_v35 }
 0x473   :  { %4333 = vmatpush3.bf16.msra.mxu0 %v4581_v34 }
 0x474   :  { %4334 = vmatprep.subr.bf16.mxu0 %v4582_v36 }
 0x477   :  { %4335 = vmatpush3.bf16.msra.mxu0 %v4583_v3 }
 0x478   :  { %4336 = vmatprep.subr.bf16.mxu0 %v4584_v41 }
 0x47b   :  { %4337 = vmatpush3.bf16.msra.mxu0 %v4585_v37 }
 0x47c   :  { %4338 = vmatprep.subr.bf16.mxu0 %v4586_v38 }
 0x47f   :  { %4339 = vmatpush3.bf16.msra.mxu0 %v4587_v39 }
 0x480   :  { %4340 = vmatprep.subr.bf16.mxu0 %v4588_v40 }
 0x483   :  { %4341 = vmatpush3.bf16.msra.mxu0 %v4589_v61 }
 0x484   :  { %4342 = vmatprep.subr.bf16.mxu0 %v4590_v63 }
 0x487   :  { %4343 = vmatpush3.bf16.msra.mxu0 %v4591_v0  ;;  %v1511_v0 = vsub.s32 6, %v5076_v6 }
 0x488   :  { %4344 = vmatprep.subr.bf16.mxu0 %v4592_v54  ;;  %v1515_v54 = vsub.s32 7, %v5076_v6 }
 0x48b   :  { %4345 = vmatpush3.bf16.msra.mxu0 %v4593_v2  ;;  %v1512_v2 = vrot.slane %v5198_v62, %v1511_v0 }
 0x48c   :  { %4346 = vmatprep.subr.bf16.mxu0 %v4594_v42  ;;  %v1516_v42 = vrot.slane %v5198_v62, %v1515_v54 }
 0x48f   :  { %4347 = vmatpush3.bf16.msra.mxu0 %v4595_v43 }
 0x492   :  { %v2921_v45 = vpop.f32.mrf.mxu0 }
 0x493   :  { %v2922_v46 = vadd.f32 %v2921_v45, %v1496_v44  ;;  %v2962_v47 = vpop.f32.mrf.mxu1 }
 0x494   :  { %v2923_v48 = vpop.f32.mrf.mxu0 }
 0x495   :  { %v2963_v49 = vadd.f32 %v2962_v47, %v2922_v46  ;;  %v2924_v9 = vadd.f32 %v2923_v48, %v1500_v55  ;;  %v2964_v50 = vpop.f32.mrf.mxu1 }
 0x496   :  { %v2925_v56 = vpop.f32.mrf.mxu0 }
 0x497   :  { %vm3135_vm10 = vcmp.ge.f32.partialorder %v2963_v49, 0.0  ;;  %v3143_v52 = vmul.f32 0.01, %v2963_v49  ;;  %v2965_v57 = vadd.f32 %v2964_v50, %v2924_v9  ;;  %v2966_v53 = vpop.f32.mrf.mxu1 }
 0x498   :  { %v2926_v51 = vpop.f32.mrf.mxu0 }
 0x499   :  { %vm3136_vm11 = vcmp.ge.f32.partialorder %v2965_v57, 0.0  ;;  %v3144_v58 = vmul.f32 0.01, %v2965_v57  ;;  %v2967_v27 = vpop.f32.mrf.mxu1  ;;  %v3151_v59 = vsel %vm3135_vm10, %v2963_v49, %v3143_v52 }
 0x49a   :  { %v3159_v4 = vpack.c.bf16 %v3151_v59, %v3151_v59 }
 0x49b   :  { %v3152_v60 = vsel %vm3136_vm11, %v2965_v57, %v3144_v58 }
 0x49c   :  { %v3160_v1 = vpack.c.bf16 %v3152_v60, %v3152_v60 }
 0x49e   :  { %3756 = vmatprep.mubr.bf16.mxu1 %v3160_v1 }
 0x49f   :  { %3757 = vmatmul.mubr.bf16.vlgmr.msra.gmra.mxu1 %v3159_v4  ;;  %v4214_v4 = vld [vmem:[%s5240_s16] ss:$0 sm:$0xff]  ;;  %s4927_s16 = smov [#allocation22]  }
 0x4a0   :  { %4355 = vmatpush3.bf16.msra.mxu1 %v4597_v29  ;;  %s3852_s2 = sshll.u32 %s4927_s16, 4  ;;  %s3853_s2 = int_to_ptr.vmem [resolvable:$true] %s3852_s2 }
 0x4a1   :  { %4356 = vmatprep.subr.bf16.mxu1 %v4598_v5  ;;  %s4868_s18 = scalar_lea.vmem %s3853_s2, 128  ;;  %p4873_p5 = scmp.lt.s32.totalorder %s3853_s2, %s3853_s2 }
 0x4a2   :  { %p4869_p4 = scmp.ne.s32.totalorder %s3853_s2, %s4868_s18  ;;  %p4874_p6 = scmp.lt.s32.totalorder %s4868_s18, %s4868_s18 }
 0x4a4   :  { %4357 = vmatpush3.bf16.msra.mxu1 %v4599_v8  ;;  %p4875_p7 = por %p4874_p6, %p4873_p5 }
 0x4a5   :  { %4358 = vmatprep.subr.bf16.mxu1 %v4600_v10 }
 0x4a6   :  { %p4876_p8 = pnand %p4875_p7, %p4869_p4 }
 0x4a8   :  { %4359 = vmatpush3.bf16.msra.mxu1 %v4601_v11 }
 0x4a9   :  { %4360 = vmatprep.subr.bf16.mxu1 %v4602_v12 }
 0x4ac   :  { %4361 = vmatpush3.bf16.msra.mxu1 %v4603_v13 }
 0x4ad   :  { %4362 = vmatprep.subr.bf16.mxu1 %v4604_v14 }
 0x4b0   :  { %4363 = vmatpush3.bf16.msra.mxu1 %v4605_v20 }
 0x4b1   :  { %4364 = vmatprep.subr.bf16.mxu1 %v4606_v18 }
 0x4b4   :  { %4365 = vmatpush3.bf16.msra.mxu1 %v4607_v21 }
 0x4b5   :  { %4366 = vmatprep.subr.bf16.mxu1 %v4608_v24 }
 0x4b8   :  { %4367 = vmatpush3.bf16.msra.mxu1 %v4609_v25 }
 0x4b9   :  { %4368 = vmatprep.subr.bf16.mxu1 %v4610_v26 }
 0x4bc   :  { %4369 = vmatpush3.bf16.msra.mxu1 %v4611_v15 }
 0x4d2   :  { %v3003_v22 = vpop.f32.mrf.mxu0 }
 0x4d3   :  { %v3004_v23 = vadd.f32 %v3003_v22, %v1504_v17  ;;  %v3044_v28 = vpop.f32.mrf.mxu1 }
 0x4d4   :  { %v3005_v30 = vpop.f32.mrf.mxu0 }
 0x4d5   :  { %v3045_v31 = vadd.f32 %v3044_v28, %v3004_v23  ;;  %v3006_v32 = vadd.f32 %v3005_v30, %v1508_v19  ;;  %v3046_v33 = vpop.f32.mrf.mxu1 }
 0x4d6   :  { %v3007_v34 = vpop.f32.mrf.mxu0 }
 0x4d7   :  { %vm3137_vm12 = vcmp.ge.f32.partialorder %v3045_v31, 0.0  ;;  %v3145_v35 = vmul.f32 0.01, %v3045_v31  ;;  %v3047_v36 = vadd.f32 %v3046_v33, %v3006_v32  ;;  %v3048_v3 = vpop.f32.mrf.mxu1 }
 0x4d8   :  { %v3008_v41 = vpop.f32.mrf.mxu0 }
 0x4d9   :  { %vm3138_vm13 = vcmp.ge.f32.partialorder %v3047_v36, 0.0  ;;  %v3146_v37 = vmul.f32 0.01, %v3047_v36  ;;  %v3049_v38 = vpop.f32.mrf.mxu1  ;;  %v3153_v39 = vsel %vm3137_vm12, %v3045_v31, %v3145_v35 }
 0x4da   :  { %v3161_v63 = vpack.c.bf16 %v3153_v39, %v3153_v39 }
 0x4db   :  { %v3154_v40 = vsel %vm3138_vm13, %v3047_v36, %v3146_v37 }
 0x4dc   :  { %v3162_v61 = vpack.c.bf16 %v3154_v40, %v3154_v40 }
 0x4de   :  { %3796 = vmatprep.mubr.bf16.mxu0 %v3162_v61 }
 0x4df   :  { %3797 = vmatmul.mubr.bf16.vlgmr.msra.gmra.mxu0 %v3161_v63 }
 0x512   :  { %v3085_v43 = vpop.f32.mrf.mxu0 }
 0x513   :  { %v3086_v44 = vadd.f32 %v3085_v43, %v1512_v2  ;;  %v3126_v55 = vpop.f32.mrf.mxu1 }
 0x514   :  { %v3087_v45 = vpop.f32.mrf.mxu0 }
 0x515   :  { %v3127_v46 = vadd.f32 %v3126_v55, %v3086_v44  ;;  %v3088_v47 = vadd.f32 %v3087_v45, %v1516_v42  ;;  %v3128_v48 = vpop.f32.mrf.mxu1 }
 0x516   :  { %v3089_v49 = vpop.f32.mrf.mxu0 }
 0x517   :  { %vm3139_vm14 = vcmp.ge.f32.partialorder %v3127_v46, 0.0  ;;  %v3147_v9 = vmul.f32 0.01, %v3127_v46  ;;  %v3129_v50 = vadd.f32 %v3128_v48, %v3088_v47  ;;  %v3130_v56 = vpop.f32.mrf.mxu1 }
 0x518   :  { %v3090_v52 = vpop.f32.mrf.mxu0 }
 0x519   :  { %vm3140_vm15 = vcmp.ge.f32.partialorder %v3129_v50, 0.0  ;;  %v3148_v57 = vmul.f32 0.01, %v3129_v50  ;;  %v3131_v6 = vpop.f32.mrf.mxu1  ;;  %v3155_v53 = vsel %vm3139_vm14, %v3127_v46, %v3147_v9 }
 0x51a   :  { %v3163_v62 = vpack.c.bf16 %v3155_v53, %v3155_v53 }
 0x51b   :  { %v3156_v51 = vsel %vm3140_vm15, %v3129_v50, %v3148_v57 }
 0x51c   :  { %v3164_v58 = vpack.c.bf16 %v3156_v51, %v3156_v51 }
 0x51e   :  { %3836 = vmatprep.mubr.bf16.mxu1 %v3164_v58 }
 0x51f   :  { %3837 = vmatmul.mubr.bf16.vlgmr.msra.gmra.mxu1 %v3163_v62 }
 0x532   :  { %v4304_v27 = vpop.f32.mrf.mxu0 }
 0x534   :  { %v4305_v59 = vpop.f32.mrf.mxu0 }
 0x535   :  { %v4306_v60 = vadd.f32 %v4305_v59, %v4304_v27 }
 0x536   :  { %v4307_v1 = vpop.f32.mrf.mxu0 }
 0x537   :  { %v3719_v10 = vadd.f32 %v4306_v60, %v4214_v4 }
 0x538   :  { %v4308_v29 = vpop.f32.mrf.mxu0 }
 0x55f   :  { %v4326_v5 = vpop.f32.mrf.mxu1 }
 0x561   :  { %v4327_v8 = vpop.f32.mrf.mxu1 }
 0x562   :  { %v4328_v11 = vadd.f32 %v4327_v8, %v4326_v5 }
 0x563   :  { %v4329_v12 = vpop.f32.mrf.mxu1 }
 0x564   :  { %v3759_v13 = vadd.f32 %v4328_v11, %v3719_v10 }
 0x565   :  { %v4330_v14 = vpop.f32.mrf.mxu1 }
 0x59f   :  { %v4348_v20 = vpop.f32.mrf.mxu0 }
 0x5a1   :  { %v4349_v18 = vpop.f32.mrf.mxu0 }
 0x5a2   :  { %v4350_v21 = vadd.f32 %v4349_v18, %v4348_v20 }
 0x5a3   :  { %v4351_v24 = vpop.f32.mrf.mxu0 }
 0x5a4   :  { %v3799_v25 = vadd.f32 %v4350_v21, %v3759_v13 }
 0x5a5   :  { %v4352_v26 = vpop.f32.mrf.mxu0 }
 0x5df   :  { %v4370_v15 = vpop.f32.mrf.mxu1 }
 0x5e1   :  { %v4371_v7 = vpop.f32.mrf.mxu1 }
 0x5e2   :  { %v4372_v16 = vadd.f32 %v4371_v7, %v4370_v15 }
 0x5e3   :  { %v4373_v17 = vpop.f32.mrf.mxu1 }
 0x5e4   :  { %v3839_v19 = vadd.f32 %v4372_v16, %v3799_v25 }
 0x5e5   :  { %v4374_v22 = vpop.f32.mrf.mxu1 }
 0x5e6   :  { %4626 = vtanh.f32 %v3839_v19 }
 0x5f3   :  { %v4627_v23 = vpop.eup %4626 }
 0x5f4   :  { %3845 = vst [vmem:[#allocation22] sm:$0xff] %v4627_v23 }
 0x5f5   :  { %4879 = shalt.err (!%p4876_p8)
}
 0x5f6   :  { %3855 = dma.vmem_to_hbm [thread:$0]  %s3853_s2, 128, %s5241_s17, [#allocation4]  }
 0x5f7   :  { %4902 = dma.done.wait [#allocation4], 128  }
 0x5f8   :  { %4903 = vsyncadd [#allocation4], 4294967168 }
 0x5f9   :  { %3859 = vsyncpa [#allocation3], 1 }
 0x5fa   :  { %3860 = vsyncpa [#allocation6], 1 }
 0x5fb   :  { %3861 = vsyncpa [#allocation9], 1 }
 0x5fc   :  { %3862 = vsyncpa [#allocation12], 1 }
 0x5fd   :  { %3863 = vsyncpa [#allocation15], 1 }
 0x5fe   :  { %3864 = vsyncpa [#allocation18], 1 }
 0x5ff   :  { %3865 = vsyncpa [#allocation21], 1 }
 0x600   :  { %3866 = vsyncpa [#allocation4], 1 }

</bundles_post_ra>
